<compile_context>
chip_gen: v5e
topology: v5e:2x2
jax: 0.10.0
libtpu: 0.0.40
codegen_flags: <defaults>
</compile_context>

<pallas_src>
import functools

import jax
import jax.numpy as jnp
import numpy as np
from jax import lax
from jax.experimental import pallas as pl
from jax.experimental.pallas import tpu as pltpu


def _round8(c):
    return ((c + 7) // 8) * 8


# ----------------------------------------------------------------------------
# Fused kernel: channels on sublanes, flattened (batch * H * W) on lanes.
# ----------------------------------------------------------------------------
def _make_fused_kernel(*, use_branch, k, act, W, Lb, layout):
    p = k // 2
    pad = p * W + p                      # largest |lane shift| of a depthwise tap
    f32 = jnp.float32

    def apply_act(y):
        if act == "relu":                # nn.ReLU6
            return jnp.clip(y, 0.0, 6.0)
        if act == "hswish":              # x * relu6(x + 3) / 6
            return y * jnp.clip(y + 3.0, 0.0, 6.0) * (1.0 / 6.0)
        return y

    def kernel(x_ref, mask_ref, const_ref, o_ref):
        def cst(name):                   # static slice out of the packed constant tile
            r, c0, w = layout[name]
            return const_ref[0:r, c0:c0 + w]

        x = x_ref[...]                   # (Cin8, Lb) f32, channels on sublanes
        masks = mask_ref[...]            # (k*k, Lb)  f32 tap-validity masks

        def fma(h, wT):
            """Tiny-K 1x1 contraction as unrolled broadcast-FMAs on full-width vregs."""
            co, ci = wT.shape
            acc = jnp.zeros((co, h.shape[1]), f32)
            for i in range(ci):          # ci <= in_channels (<= 12), fully unrolled
                acc = acc + h[i:i + 1, :] * wT[:, i:i + 1]
            return acc

        def pw(h, w_name, sb_name):      # 1x1 conv + folded BN + activation
            sb = cst(sb_name)
            return apply_act(fma(h, cst(w_name)) * sb[:, 0:1] + sb[:, 1:2])

        def dw(h, w_name, sb_name):
            """Depthwise kxk conv + folded BN, computed at full spatial resolution.

            h is (C, Lb) with lane index n*H*W + hh*W + ww.  Each tap is a static lane
            shift of a zero-extended copy of h, masked at image borders (the masks also
            kill any cross-image bleed), times a per-channel tap weight.
            """
            w_taps = cst(w_name)         # (C, k*k)
            sb = cst(sb_name)            # (C, 2) = [scale, bias]
            c = h.shape[0]
            if pad:
                z = jnp.zeros((c, pad), f32)
                hx = jnp.concatenate([z, h, z], axis=1)     # (C, Lb + 2*pad)
            else:
                hx = h
            acc = jnp.zeros_like(h)
            t = 0
            for dh in range(-p, p + 1):
                for dwi in range(-p, p + 1):
                    s = dh * W + dwi
                    tap = hx[:, pad + s:pad + s + Lb] * masks[t:t + 1, :]
                    acc = acc + tap * w_taps[:, t:t + 1]
                    t += 1
            return acc * sb[:, 0:1] + sb[:, 1:2]            # BN only (no activation)

        # branch_2: 1x1 (+act) -> depthwise kxk (final 1x1 folded below)
        h2 = pw(x, "pw1_wT", "pw1_sb")
        h2 = dw(h2, "dw2_w", "dw2_sb")
        # branch_1: depthwise kxk (use_branch) or the identity carrier (x itself)
        a = dw(x, "dw1_w", "dw1_sb") if use_branch else x

        # fused final 1x1s + concat + channel_shuffle(groups=2):
        #   output row 2i  <- branch_1 channel i, row 2i+1 <- branch_2 channel i
        # (wc1T / wc2T / fin_sb were interleaved accordingly by the wrapper, so the store
        #  below is already in shuffled channel order).
        fin = cst("fin_sb")
        z = fma(a, cst("wc1T")) + fma(h2, cst("wc2T"))
        z = z * fin[:, 0:1] + fin[:, 1:2]
        za = apply_act(z)
        if use_branch:
            out = za
        else:
            # even rows = identity branch: bypass BN (scale=1, bias=0) AND the activation
            rows = lax.broadcasted_iota(jnp.int32, z.shape, 0)
            out = jnp.where((rows & 1) == 1, za, z)
        o_ref[...] = out.astype(o_ref.dtype)

    return kernel


# ----------------------------------------------------------------------------
# Wrapper: layout plumbing + constant packing + single pallas_call
# ----------------------------------------------------------------------------
def shuffle_block_forward(x_nchw, params, *, in_channels, out_channels,
                          kernel_size, stride, activation):
    if activation not in ("relu", "hswish", None):
        # TODO(synk): 'prelu' (learned per-channel slope) not implemented.
        raise NotImplementedError("activation 'prelu' not implemented")

    N, Cin, H, W = x_nchw.shape
    assert Cin == in_channels
    use_branch = (stride == 2) or (in_channels != out_channels)
    k, p = kernel_size, kernel_size // 2
    kk = k * k
    bo = out_channels // 2
    Cout = out_channels
    Cin8, bo8, Cout8 = _round8(Cin), _round8(bo), _round8(Cout)
    f32 = jnp.float32

    # ---- layout plumbing (XLA): NCHW -> (channels, N*H*W); pad channel rows to 8-mult.
    x2d = jnp.transpose(x_nchw.astype(f32), (1, 0, 2, 3)).reshape(Cin, N * H * W)
    if Cin8 > Cin:
        x2d = jnp.concatenate([x2d, jnp.zeros((Cin8 - Cin, N * H * W), f32)], axis=0)

    # ---- batch blocking: whole batch per grid step unless that exceeds ~8 MiB
    Nb = N
    blk_bytes = (Cin8 + Cout8) * H * W * 4
    if N * blk_bytes > (8 << 20):
        for nb in range(max(1, (8 << 20) // blk_bytes), 0, -1):
            if N % nb == 0 and (nb * H * W) % 128 == 0:
                Nb = nb
                break
    Lb = Nb * H * W
    grid = (N // Nb,)

    # ---- depthwise tap-validity masks on the flattened (n, h, w) lane axis (host-built)
    hh = np.repeat(np.arange(H), W)
    ww = np.tile(np.arange(W), H)
    mk = np.empty((kk, H * W), np.float32)
    t = 0
    for dh in range(-p, p + 1):
        for dwi in range(-p, p + 1):
            mk[t] = ((hh + dh >= 0) & (hh + dh < H) &
                     (ww + dwi >= 0) & (ww + dwi < W)).astype(np.float32)
            t += 1
    masks = jnp.asarray(np.tile(mk, (1, Nb)))                    # (kk, Lb)

    # ---- pack every parameter into ONE small constant tile (inference BN pre-folded)
    pcs = []

    def add(name, arr):
        pcs.append((name, arr.astype(f32)))

    w = params["b2_pw1_w"]                                       # (Cin, bo) or (bo, bo)
    pw1_wT = jnp.zeros((bo8, Cin), f32)
    pw1_wT = (pw1_wT.at[:bo, :].set(w.T) if use_branch
              else pw1_wT.at[:bo, bo:].set(w.T))   # fold the x -> (x1, x2) channel split
    s, b = params["b2_pw1_bn"]
    add("pw1_wT", pw1_wT)
    add("pw1_sb", jnp.zeros((bo8, 2), f32).at[:bo, 0].set(s).at[:bo, 1].set(b))

    add("dw2_w", jnp.zeros((bo8, kk), f32).at[:bo, :].set(params["b2_dw_w"].T))
    s, b = params["b2_dw_bn"]
    add("dw2_sb", jnp.zeros((bo8, 2), f32).at[:bo, 0].set(s).at[:bo, 1].set(b))

    if use_branch:
        add("dw1_w", jnp.zeros((Cin8, kk), f32).at[:Cin, :].set(params["b1_dw_w"].T))
        s, b = params["b1_dw_bn"]
        add("dw1_sb", jnp.zeros((Cin8, 2), f32).at[:Cin, 0].set(s).at[:Cin, 1].set(b))

    # final 1x1s with concat + channel_shuffle(groups=2) folded into interleaved rows
    fin_sb = jnp.zeros((Cout8, 2), f32)
    if use_branch:
        w1 = params["b1_pw_w"]                                   # (Cin, bo)
        s1, b1 = params["b1_pw_bn"]
        wc1T = jnp.zeros((Cout8, Cin), f32).at[0:2 * bo:2, :].set(w1.T)
        fin_sb = fin_sb.at[0:2 * bo:2, 0].set(s1).at[0:2 * bo:2, 1].set(b1)
    else:
        wc1T = jnp.zeros((Cout8, bo), f32).at[0:2 * bo:2, :].set(jnp.eye(bo, dtype=f32))
        fin_sb = fin_sb.at[0:2 * bo:2, 0].set(1.0)               # identity: scale 1, bias 0
    w2 = params["b2_pw2_w"]                                      # (bo, bo)
    s2, b2 = params["b2_pw2_bn"]
    wc2T = jnp.zeros((Cout8, bo), f32).at[1:2 * bo:2, :].set(w2.T)
    fin_sb = fin_sb.at[1:2 * bo:2, 0].set(s2).at[1:2 * bo:2, 1].set(b2)
    add("wc1T", wc1T)
    add("wc2T", wc2T)
    add("fin_sb", fin_sb)

    rmax = max(a.shape[0] for _, a in pcs)
    layout, cols, off = {}, [], 0
    for name, arr in pcs:
        r, c = arr.shape
        layout[name] = (r, off, c)
        if r < rmax:
            arr = jnp.concatenate([arr, jnp.zeros((rmax - r, c), f32)], axis=0)
        cols.append(arr)
        off += c
    consts = jnp.concatenate(cols, axis=1)                       # one tiny VMEM tile

    kernel = _make_fused_kernel(use_branch=use_branch, k=k, act=activation,
                                W=W, Lb=Lb, layout=layout)
    out2d = pl.pallas_call(
        kernel,
        out_shape=jax.ShapeDtypeStruct((Cout8, N * H * W), f32),
        grid=grid,
        in_specs=[
            pl.BlockSpec((Cin8, Lb), lambda n: (0, n)),
            pl.BlockSpec(masks.shape, lambda n: (0, 0)),
            pl.BlockSpec(consts.shape, lambda n: (0, 0)),
        ],
        out_specs=pl.BlockSpec((Cout8, Lb), lambda n: (0, n)),
        compiler_params=pltpu.CompilerParams(dimension_semantics=("parallel",)),
    )(x2d, masks, consts)

    # ---- layout plumbing back (XLA): (Cout, N*H*W) -> NCHW (+ exact stride subsample)
    out = out2d[:Cout].reshape(Cout, N, H, W)
    if stride > 1:
        out = out[:, :, ::stride, ::stride]
    return jnp.transpose(out, (1, 0, 2, 3))


# ----------------------------------------------------------------------------
# Parameters (deterministic, synthetic; inference-mode BN folded)
# ----------------------------------------------------------------------------
def _fold_bn(key, c, eps=1e-5):
    k1, k2, k3, k4 = jax.random.split(key, 4)
    gamma = 1.0 + 0.1 * jax.random.normal(k1, (c,), jnp.float32)
    beta = 0.1 * jax.random.normal(k2, (c,), jnp.float32)
    mean = 0.05 * jax.random.normal(k3, (c,), jnp.float32)
    var = jnp.abs(jax.random.normal(k4, (c,), jnp.float32)) + 0.5
    scale = gamma / jnp.sqrt(var + eps)
    bias = beta - mean * scale
    return scale, bias


def init_shuffle_block_params(key, in_channels, out_channels, kernel_size, stride):
    bo = out_channels // 2
    use_branch = (stride == 2) or (in_channels != out_channels)
    b2_in = in_channels if use_branch else bo
    keys = jax.random.split(key, 10)

    def conv_w(k, shape):
        return 0.1 * jax.random.normal(k, shape, jnp.float32)

    params = {}
    if use_branch:
        params["b1_dw_w"] = conv_w(keys[0], (kernel_size * kernel_size, in_channels))
        params["b1_dw_bn"] = _fold_bn(keys[1], in_channels)
        params["b1_pw_w"] = conv_w(keys[2], (in_channels, bo))
        params["b1_pw_bn"] = _fold_bn(keys[3], bo)
    params["b2_pw1_w"] = conv_w(keys[4], (b2_in, bo))
    params["b2_pw1_bn"] = _fold_bn(keys[5], bo)
    params["b2_dw_w"] = conv_w(keys[6], (kernel_size * kernel_size, bo))
    params["b2_dw_bn"] = _fold_bn(keys[7], bo)
    params["b2_pw2_w"] = conv_w(keys[8], (bo, bo))
    params["b2_pw2_bn"] = _fold_bn(keys[9], bo)
    return params


# ----------------------------------------------------------------------------
# Pure-JAX reference (validation only)
# ----------------------------------------------------------------------------
def channel_shuffle_nhwc(x, groups=2):
    N, H, W, C = x.shape
    x = x.reshape(N, H, W, groups, C // groups)
    x = jnp.swapaxes(x, 3, 4)
    return x.reshape(N, H, W, C)


def _ref_pw(x, w, scale, bias, act):
    y = jnp.einsum("nhwc,cd->nhwd", x, w, precision=lax.Precision.HIGHEST)
    y = y * scale + bias
    if act == "relu":
        y = jnp.clip(y, 0.0, 6.0)
    elif act == "hswish":
        y = y * jnp.clip(y + 3.0, 0.0, 6.0) / 6.0
    return y


def _ref_dw(x, w, scale, bias, k, stride):
    C = x.shape[-1]
    wk = w.reshape(k, k, 1, C)
    y = lax.conv_general_dilated(
        x, wk, window_strides=(stride, stride),
        padding=[(k // 2, k // 2), (k // 2, k // 2)],
        dimension_numbers=("NHWC", "HWIO", "NHWC"),
        feature_group_count=C, precision=lax.Precision.HIGHEST)
    return y * scale + bias


def shuffle_block_reference(x_nchw, params, *, in_channels, out_channels,
                            kernel_size, stride, activation):
    use_branch = (stride == 2) or (in_channels != out_channels)
    x = jnp.transpose(x_nchw, (0, 2, 3, 1))
    if use_branch:
        x1, x2 = x, x
    else:
        c = x.shape[-1] // 2
        x1, x2 = x[..., :c], x[..., c:]
    if use_branch:
        y1 = _ref_dw(x1, params["b1_dw_w"], *params["b1_dw_bn"], kernel_size, stride)
        y1 = _ref_pw(y1, params["b1_pw_w"], *params["b1_pw_bn"], activation)
    else:
        y1 = x1
    y2 = _ref_pw(x2, params["b2_pw1_w"], *params["b2_pw1_bn"], activation)
    y2 = _ref_dw(y2, params["b2_dw_w"], *params["b2_dw_bn"], kernel_size, stride)
    y2 = _ref_pw(y2, params["b2_pw2_w"], *params["b2_pw2_bn"], activation)
    y = jnp.concatenate([y1, y2], axis=-1)
    y = channel_shuffle_nhwc(y, groups=2)
    return jnp.transpose(y, (0, 3, 1, 2))


# ----------------------------------------------------------------------------
if __name__ == "__main__":
    key = jax.random.PRNGKey(0)
    k_x1, k_p1, k_x2, k_p2, k_x3, k_p3 = jax.random.split(key, 6)
    N, H, W = 2, 16, 16

    def run(kx, kp, cfg):
        x = jax.random.normal(kx, (N, cfg["in_channels"], H, W), jnp.float32)
        params = init_shuffle_block_params(kp, cfg["in_channels"], cfg["out_channels"],
                                           cfg["kernel_size"], cfg["stride"])
        fwd = jax.jit(functools.partial(shuffle_block_forward, **cfg))
        out = jax.block_until_ready(fwd(x, params))
        ref = shuffle_block_reference(x, params, **cfg)
        np.testing.assert_allclose(np.asarray(out), np.asarray(ref), rtol=1e-4, atol=1e-4)
        return out

    # --- Config 1: use_branch=True (in != out), stride 1, ReLU6 ---
    cfg1 = dict(in_channels=4, out_channels=8, kernel_size=3, stride=1, activation="relu")
    o1 = run(k_x1, k_p1, cfg1)
    assert o1.shape == (N, 8, H, W), o1.shape

    # --- Config 2: use_branch=False (in == out, stride 1), HSwish ---
    cfg2 = dict(in_channels=8, out_channels=8, kernel_size=3, stride=1, activation="hswish")
    o2 = run(k_x2, k_p2, cfg2)
    assert o2.shape == (N, 8, H, W), o2.shape

    # --- Config 3: stride 2 (downsampling branch), ReLU6 ---
    cfg3 = dict(in_channels=4, out_channels=8, kernel_size=3, stride=2, activation="relu")
    o3 = run(k_x3, k_p3, cfg3)
    assert o3.shape == (N, 8, H // 2, W // 2), o3.shape

    print("KERNEL_OK")
</pallas_src>

<mosaic_0001>
module attributes {stable_mosaic.version = 11 : i64} {
  func.func @kernel(%arg0: i32, %arg1: memref<8x512xf32, #tpu.memory_space<vmem>>, %arg2: memref<9x512xf32, #tpu.memory_space<vmem>>, %arg3: memref<8x38xf32, #tpu.memory_space<vmem>>, %arg4: memref<8x512xf32, #tpu.memory_space<vmem>>) attributes {dimension_semantics = [#tpu.dimension_semantics<parallel>], iteration_bounds = array<i64: 1>, scalar_prefetch = 0 : i64, scratch_operands = 0 : i64, tpu.core_type = #tpu.core_type<tc>, window_params = [{transform_indices = @transform_0, window_bounds = array<i64: 8, 512>}, {pipeline_mode = #tpu.pipeline_mode<synchronous>, transform_indices = @transform_1, window_bounds = array<i64: 9, 512>}, {pipeline_mode = #tpu.pipeline_mode<synchronous>, transform_indices = @transform_2, window_bounds = array<i64: 8, 38>}, {transform_indices = @transform_3, window_bounds = array<i64: 8, 512>}]} {
    %c0 = arith.constant 0 : index
    %c0_0 = arith.constant 0 : index
    %0 = vector.load %arg1[%c0, %c0_0] : memref<8x512xf32, #tpu.memory_space<vmem>>, vector<8x512xf32>
    %c0_1 = arith.constant 0 : index
    %c0_2 = arith.constant 0 : index
    %1 = vector.load %arg2[%c0_1, %c0_2] : memref<9x512xf32, #tpu.memory_space<vmem>>, vector<9x512xf32>
    %c0_3 = arith.constant 0 : index
    %c4 = arith.constant 4 : index
    %2 = vector.load %arg3[%c0_3, %c4] : memref<8x38xf32, #tpu.memory_space<vmem>>, vector<8x2xf32>
    %c0_4 = arith.constant 0 : index
    %c0_5 = arith.constant 0 : index
    %3 = vector.load %arg3[%c0_4, %c0_5] : memref<8x38xf32, #tpu.memory_space<vmem>>, vector<8x4xf32>
    %cst = arith.constant 0.000000e+00 : f32
    %4 = vector.broadcast %cst : f32 to vector<8x512xf32>
    %5 = vector.extract_strided_slice %0 {offsets = [0, 0], sizes = [1, 512], strides = [1, 1]} : vector<8x512xf32> to vector<1x512xf32>
    %6 = vector.extract_strided_slice %3 {offsets = [0, 0], sizes = [8, 1], strides = [1, 1]} : vector<8x4xf32> to vector<8x1xf32>
    %7 = vector.broadcast %5 : vector<1x512xf32> to vector<8x512xf32>
    %8 = vector.broadcast %6 : vector<8x1xf32> to vector<8x512xf32>
    %9 = arith.mulf %7, %8 : vector<8x512xf32>
    %10 = arith.addf %4, %9 : vector<8x512xf32>
    %11 = vector.extract_strided_slice %0 {offsets = [1, 0], sizes = [1, 512], strides = [1, 1]} : vector<8x512xf32> to vector<1x512xf32>
    %12 = vector.extract_strided_slice %3 {offsets = [0, 1], sizes = [8, 1], strides = [1, 1]} : vector<8x4xf32> to vector<8x1xf32>
    %13 = vector.broadcast %11 : vector<1x512xf32> to vector<8x512xf32>
    %14 = vector.broadcast %12 : vector<8x1xf32> to vector<8x512xf32>
    %15 = arith.mulf %13, %14 : vector<8x512xf32>
    %16 = arith.addf %10, %15 : vector<8x512xf32>
    %17 = vector.extract_strided_slice %0 {offsets = [2, 0], sizes = [1, 512], strides = [1, 1]} : vector<8x512xf32> to vector<1x512xf32>
    %18 = vector.extract_strided_slice %3 {offsets = [0, 2], sizes = [8, 1], strides = [1, 1]} : vector<8x4xf32> to vector<8x1xf32>
    %19 = vector.broadcast %17 : vector<1x512xf32> to vector<8x512xf32>
    %20 = vector.broadcast %18 : vector<8x1xf32> to vector<8x512xf32>
    %21 = arith.mulf %19, %20 : vector<8x512xf32>
    %22 = arith.addf %16, %21 : vector<8x512xf32>
    %23 = vector.extract_strided_slice %0 {offsets = [3, 0], sizes = [1, 512], strides = [1, 1]} : vector<8x512xf32> to vector<1x512xf32>
    %24 = vector.extract_strided_slice %3 {offsets = [0, 3], sizes = [8, 1], strides = [1, 1]} : vector<8x4xf32> to vector<8x1xf32>
    %25 = vector.broadcast %23 : vector<1x512xf32> to vector<8x512xf32>
    %26 = vector.broadcast %24 : vector<8x1xf32> to vector<8x512xf32>
    %27 = arith.mulf %25, %26 : vector<8x512xf32>
    %28 = arith.addf %22, %27 : vector<8x512xf32>
    %29 = vector.extract_strided_slice %2 {offsets = [0, 0], sizes = [8, 1], strides = [1, 1]} : vector<8x2xf32> to vector<8x1xf32>
    %30 = vector.broadcast %29 : vector<8x1xf32> to vector<8x512xf32>
    %31 = arith.mulf %28, %30 : vector<8x512xf32>
    %32 = vector.extract_strided_slice %2 {offsets = [0, 1], sizes = [8, 1], strides = [1, 1]} : vector<8x2xf32> to vector<8x1xf32>
    %33 = vector.broadcast %32 : vector<8x1xf32> to vector<8x512xf32>
    %34 = arith.addf %31, %33 : vector<8x512xf32>
    %cst_6 = arith.constant 0.000000e+00 : f32
    %cst_7 = arith.constant 6.000000e+00 : f32
    %35 = vector.broadcast %cst_6 : f32 to vector<8x512xf32>
    %36 = arith.maximumf %35, %34 : vector<8x512xf32>
    %37 = vector.broadcast %cst_7 : f32 to vector<8x512xf32>
    %38 = arith.minimumf %37, %36 : vector<8x512xf32>
    %c0_8 = arith.constant 0 : index
    %c6 = arith.constant 6 : index
    %39 = vector.load %arg3[%c0_8, %c6] : memref<8x38xf32, #tpu.memory_space<vmem>>, vector<8x9xf32>
    %c0_9 = arith.constant 0 : index
    %c15 = arith.constant 15 : index
    %40 = vector.load %arg3[%c0_9, %c15] : memref<8x38xf32, #tpu.memory_space<vmem>>, vector<8x2xf32>
    %cst_10 = arith.constant 0.000000e+00 : f32
    %41 = vector.broadcast %cst_10 : f32 to vector<8x17xf32>
    %42 = tpu.concatenate %41, %38, %41 in 1 : vector<8x17xf32>, vector<8x512xf32>, vector<8x17xf32> -> vector<8x546xf32>
    %cst_11 = arith.constant 0.000000e+00 : f32
    %43 = vector.broadcast %cst_11 : f32 to vector<8x512xf32>
    %44 = vector.extract_strided_slice %42 {offsets = [0, 0], sizes = [8, 512], strides = [1, 1]} : vector<8x546xf32> to vector<8x512xf32>
    %45 = vector.extract_strided_slice %1 {offsets = [0, 0], sizes = [1, 512], strides = [1, 1]} : vector<9x512xf32> to vector<1x512xf32>
    %46 = vector.broadcast %45 : vector<1x512xf32> to vector<8x512xf32>
    %47 = arith.mulf %44, %46 : vector<8x512xf32>
    %48 = vector.extract_strided_slice %39 {offsets = [0, 0], sizes = [8, 1], strides = [1, 1]} : vector<8x9xf32> to vector<8x1xf32>
    %49 = vector.broadcast %48 : vector<8x1xf32> to vector<8x512xf32>
    %50 = arith.mulf %47, %49 : vector<8x512xf32>
    %51 = arith.addf %43, %50 : vector<8x512xf32>
    %52 = vector.extract_strided_slice %42 {offsets = [0, 1], sizes = [8, 512], strides = [1, 1]} : vector<8x546xf32> to vector<8x512xf32>
    %53 = vector.extract_strided_slice %1 {offsets = [1, 0], sizes = [1, 512], strides = [1, 1]} : vector<9x512xf32> to vector<1x512xf32>
    %54 = vector.broadcast %53 : vector<1x512xf32> to vector<8x512xf32>
    %55 = arith.mulf %52, %54 : vector<8x512xf32>
    %56 = vector.extract_strided_slice %39 {offsets = [0, 1], sizes = [8, 1], strides = [1, 1]} : vector<8x9xf32> to vector<8x1xf32>
    %57 = vector.broadcast %56 : vector<8x1xf32> to vector<8x512xf32>
    %58 = arith.mulf %55, %57 : vector<8x512xf32>
    %59 = arith.addf %51, %58 : vector<8x512xf32>
    %60 = vector.extract_strided_slice %42 {offsets = [0, 2], sizes = [8, 512], strides = [1, 1]} : vector<8x546xf32> to vector<8x512xf32>
    %61 = vector.extract_strided_slice %1 {offsets = [2, 0], sizes = [1, 512], strides = [1, 1]} : vector<9x512xf32> to vector<1x512xf32>
    %62 = vector.broadcast %61 : vector<1x512xf32> to vector<8x512xf32>
    %63 = arith.mulf %60, %62 : vector<8x512xf32>
    %64 = vector.extract_strided_slice %39 {offsets = [0, 2], sizes = [8, 1], strides = [1, 1]} : vector<8x9xf32> to vector<8x1xf32>
    %65 = vector.broadcast %64 : vector<8x1xf32> to vector<8x512xf32>
    %66 = arith.mulf %63, %65 : vector<8x512xf32>
    %67 = arith.addf %59, %66 : vector<8x512xf32>
    %68 = vector.extract_strided_slice %42 {offsets = [0, 16], sizes = [8, 512], strides = [1, 1]} : vector<8x546xf32> to vector<8x512xf32>
    %69 = vector.extract_strided_slice %1 {offsets = [3, 0], sizes = [1, 512], strides = [1, 1]} : vector<9x512xf32> to vector<1x512xf32>
    %70 = vector.broadcast %69 : vector<1x512xf32> to vector<8x512xf32>
    %71 = arith.mulf %68, %70 : vector<8x512xf32>
    %72 = vector.extract_strided_slice %39 {offsets = [0, 3], sizes = [8, 1], strides = [1, 1]} : vector<8x9xf32> to vector<8x1xf32>
    %73 = vector.broadcast %72 : vector<8x1xf32> to vector<8x512xf32>
    %74 = arith.mulf %71, %73 : vector<8x512xf32>
    %75 = arith.addf %67, %74 : vector<8x512xf32>
    %76 = vector.extract_strided_slice %42 {offsets = [0, 17], sizes = [8, 512], strides = [1, 1]} : vector<8x546xf32> to vector<8x512xf32>
    %77 = vector.extract_strided_slice %1 {offsets = [4, 0], sizes = [1, 512], strides = [1, 1]} : vector<9x512xf32> to vector<1x512xf32>
    %78 = vector.broadcast %77 : vector<1x512xf32> to vector<8x512xf32>
    %79 = arith.mulf %76, %78 : vector<8x512xf32>
    %80 = vector.extract_strided_slice %39 {offsets = [0, 4], sizes = [8, 1], strides = [1, 1]} : vector<8x9xf32> to vector<8x1xf32>
    %81 = vector.broadcast %80 : vector<8x1xf32> to vector<8x512xf32>
    %82 = arith.mulf %79, %81 : vector<8x512xf32>
    %83 = arith.addf %75, %82 : vector<8x512xf32>
    %84 = vector.extract_strided_slice %42 {offsets = [0, 18], sizes = [8, 512], strides = [1, 1]} : vector<8x546xf32> to vector<8x512xf32>
    %85 = vector.extract_strided_slice %1 {offsets = [5, 0], sizes = [1, 512], strides = [1, 1]} : vector<9x512xf32> to vector<1x512xf32>
    %86 = vector.broadcast %85 : vector<1x512xf32> to vector<8x512xf32>
    %87 = arith.mulf %84, %86 : vector<8x512xf32>
    %88 = vector.extract_strided_slice %39 {offsets = [0, 5], sizes = [8, 1], strides = [1, 1]} : vector<8x9xf32> to vector<8x1xf32>
    %89 = vector.broadcast %88 : vector<8x1xf32> to vector<8x512xf32>
    %90 = arith.mulf %87, %89 : vector<8x512xf32>
    %91 = arith.addf %83, %90 : vector<8x512xf32>
    %92 = vector.extract_strided_slice %42 {offsets = [0, 32], sizes = [8, 512], strides = [1, 1]} : vector<8x546xf32> to vector<8x512xf32>
    %93 = vector.extract_strided_slice %1 {offsets = [6, 0], sizes = [1, 512], strides = [1, 1]} : vector<9x512xf32> to vector<1x512xf32>
    %94 = vector.broadcast %93 : vector<1x512xf32> to vector<8x512xf32>
    %95 = arith.mulf %92, %94 : vector<8x512xf32>
    %96 = vector.extract_strided_slice %39 {offsets = [0, 6], sizes = [8, 1], strides = [1, 1]} : vector<8x9xf32> to vector<8x1xf32>
    %97 = vector.broadcast %96 : vector<8x1xf32> to vector<8x512xf32>
    %98 = arith.mulf %95, %97 : vector<8x512xf32>
    %99 = arith.addf %91, %98 : vector<8x512xf32>
    %100 = vector.extract_strided_slice %42 {offsets = [0, 33], sizes = [8, 512], strides = [1, 1]} : vector<8x546xf32> to vector<8x512xf32>
    %101 = vector.extract_strided_slice %1 {offsets = [7, 0], sizes = [1, 512], strides = [1, 1]} : vector<9x512xf32> to vector<1x512xf32>
    %102 = vector.broadcast %101 : vector<1x512xf32> to vector<8x512xf32>
    %103 = arith.mulf %100, %102 : vector<8x512xf32>
    %104 = vector.extract_strided_slice %39 {offsets = [0, 7], sizes = [8, 1], strides = [1, 1]} : vector<8x9xf32> to vector<8x1xf32>
    %105 = vector.broadcast %104 : vector<8x1xf32> to vector<8x512xf32>
    %106 = arith.mulf %103, %105 : vector<8x512xf32>
    %107 = arith.addf %99, %106 : vector<8x512xf32>
    %108 = vector.extract_strided_slice %42 {offsets = [0, 34], sizes = [8, 512], strides = [1, 1]} : vector<8x546xf32> to vector<8x512xf32>
    %109 = vector.extract_strided_slice %1 {offsets = [8, 0], sizes = [1, 512], strides = [1, 1]} : vector<9x512xf32> to vector<1x512xf32>
    %110 = vector.broadcast %109 : vector<1x512xf32> to vector<8x512xf32>
    %111 = arith.mulf %108, %110 : vector<8x512xf32>
    %112 = vector.extract_strided_slice %39 {offsets = [0, 8], sizes = [8, 1], strides = [1, 1]} : vector<8x9xf32> to vector<8x1xf32>
    %113 = vector.broadcast %112 : vector<8x1xf32> to vector<8x512xf32>
    %114 = arith.mulf %111, %113 : vector<8x512xf32>
    %115 = arith.addf %107, %114 : vector<8x512xf32>
    %116 = vector.extract_strided_slice %40 {offsets = [0, 0], sizes = [8, 1], strides = [1, 1]} : vector<8x2xf32> to vector<8x1xf32>
    %117 = vector.broadcast %116 : vector<8x1xf32> to vector<8x512xf32>
    %118 = arith.mulf %115, %117 : vector<8x512xf32>
    %119 = vector.extract_strided_slice %40 {offsets = [0, 1], sizes = [8, 1], strides = [1, 1]} : vector<8x2xf32> to vector<8x1xf32>
    %120 = vector.broadcast %119 : vector<8x1xf32> to vector<8x512xf32>
    %121 = arith.addf %118, %120 : vector<8x512xf32>
    %c0_12 = arith.constant 0 : index
    %c17 = arith.constant 17 : index
    %122 = vector.load %arg3[%c0_12, %c17] : memref<8x38xf32, #tpu.memory_space<vmem>>, vector<8x9xf32>
    %c0_13 = arith.constant 0 : index
    %c26 = arith.constant 26 : index
    %123 = vector.load %arg3[%c0_13, %c26] : memref<8x38xf32, #tpu.memory_space<vmem>>, vector<8x2xf32>
    %cst_14 = arith.constant 0.000000e+00 : f32
    %124 = vector.broadcast %cst_14 : f32 to vector<8x17xf32>
    %125 = tpu.concatenate %124, %0, %124 in 1 : vector<8x17xf32>, vector<8x512xf32>, vector<8x17xf32> -> vector<8x546xf32>
    %cst_15 = arith.constant 0.000000e+00 : f32
    %126 = vector.broadcast %cst_15 : f32 to vector<8x512xf32>
    %127 = vector.extract_strided_slice %125 {offsets = [0, 0], sizes = [8, 512], strides = [1, 1]} : vector<8x546xf32> to vector<8x512xf32>
    %128 = vector.extract_strided_slice %1 {offsets = [0, 0], sizes = [1, 512], strides = [1, 1]} : vector<9x512xf32> to vector<1x512xf32>
    %129 = vector.broadcast %128 : vector<1x512xf32> to vector<8x512xf32>
    %130 = arith.mulf %127, %129 : vector<8x512xf32>
    %131 = vector.extract_strided_slice %122 {offsets = [0, 0], sizes = [8, 1], strides = [1, 1]} : vector<8x9xf32> to vector<8x1xf32>
    %132 = vector.broadcast %131 : vector<8x1xf32> to vector<8x512xf32>
    %133 = arith.mulf %130, %132 : vector<8x512xf32>
    %134 = arith.addf %126, %133 : vector<8x512xf32>
    %135 = vector.extract_strided_slice %125 {offsets = [0, 1], sizes = [8, 512], strides = [1, 1]} : vector<8x546xf32> to vector<8x512xf32>
    %136 = vector.extract_strided_slice %1 {offsets = [1, 0], sizes = [1, 512], strides = [1, 1]} : vector<9x512xf32> to vector<1x512xf32>
    %137 = vector.broadcast %136 : vector<1x512xf32> to vector<8x512xf32>
    %138 = arith.mulf %135, %137 : vector<8x512xf32>
    %139 = vector.extract_strided_slice %122 {offsets = [0, 1], sizes = [8, 1], strides = [1, 1]} : vector<8x9xf32> to vector<8x1xf32>
    %140 = vector.broadcast %139 : vector<8x1xf32> to vector<8x512xf32>
    %141 = arith.mulf %138, %140 : vector<8x512xf32>
    %142 = arith.addf %134, %141 : vector<8x512xf32>
    %143 = vector.extract_strided_slice %125 {offsets = [0, 2], sizes = [8, 512], strides = [1, 1]} : vector<8x546xf32> to vector<8x512xf32>
    %144 = vector.extract_strided_slice %1 {offsets = [2, 0], sizes = [1, 512], strides = [1, 1]} : vector<9x512xf32> to vector<1x512xf32>
    %145 = vector.broadcast %144 : vector<1x512xf32> to vector<8x512xf32>
    %146 = arith.mulf %143, %145 : vector<8x512xf32>
    %147 = vector.extract_strided_slice %122 {offsets = [0, 2], sizes = [8, 1], strides = [1, 1]} : vector<8x9xf32> to vector<8x1xf32>
    %148 = vector.broadcast %147 : vector<8x1xf32> to vector<8x512xf32>
    %149 = arith.mulf %146, %148 : vector<8x512xf32>
    %150 = arith.addf %142, %149 : vector<8x512xf32>
    %151 = vector.extract_strided_slice %125 {offsets = [0, 16], sizes = [8, 512], strides = [1, 1]} : vector<8x546xf32> to vector<8x512xf32>
    %152 = vector.extract_strided_slice %1 {offsets = [3, 0], sizes = [1, 512], strides = [1, 1]} : vector<9x512xf32> to vector<1x512xf32>
    %153 = vector.broadcast %152 : vector<1x512xf32> to vector<8x512xf32>
    %154 = arith.mulf %151, %153 : vector<8x512xf32>
    %155 = vector.extract_strided_slice %122 {offsets = [0, 3], sizes = [8, 1], strides = [1, 1]} : vector<8x9xf32> to vector<8x1xf32>
    %156 = vector.broadcast %155 : vector<8x1xf32> to vector<8x512xf32>
    %157 = arith.mulf %154, %156 : vector<8x512xf32>
    %158 = arith.addf %150, %157 : vector<8x512xf32>
    %159 = vector.extract_strided_slice %125 {offsets = [0, 17], sizes = [8, 512], strides = [1, 1]} : vector<8x546xf32> to vector<8x512xf32>
    %160 = vector.extract_strided_slice %1 {offsets = [4, 0], sizes = [1, 512], strides = [1, 1]} : vector<9x512xf32> to vector<1x512xf32>
    %161 = vector.broadcast %160 : vector<1x512xf32> to vector<8x512xf32>
    %162 = arith.mulf %159, %161 : vector<8x512xf32>
    %163 = vector.extract_strided_slice %122 {offsets = [0, 4], sizes = [8, 1], strides = [1, 1]} : vector<8x9xf32> to vector<8x1xf32>
    %164 = vector.broadcast %163 : vector<8x1xf32> to vector<8x512xf32>
    %165 = arith.mulf %162, %164 : vector<8x512xf32>
    %166 = arith.addf %158, %165 : vector<8x512xf32>
    %167 = vector.extract_strided_slice %125 {offsets = [0, 18], sizes = [8, 512], strides = [1, 1]} : vector<8x546xf32> to vector<8x512xf32>
    %168 = vector.extract_strided_slice %1 {offsets = [5, 0], sizes = [1, 512], strides = [1, 1]} : vector<9x512xf32> to vector<1x512xf32>
    %169 = vector.broadcast %168 : vector<1x512xf32> to vector<8x512xf32>
    %170 = arith.mulf %167, %169 : vector<8x512xf32>
    %171 = vector.extract_strided_slice %122 {offsets = [0, 5], sizes = [8, 1], strides = [1, 1]} : vector<8x9xf32> to vector<8x1xf32>
    %172 = vector.broadcast %171 : vector<8x1xf32> to vector<8x512xf32>
    %173 = arith.mulf %170, %172 : vector<8x512xf32>
    %174 = arith.addf %166, %173 : vector<8x512xf32>
    %175 = vector.extract_strided_slice %125 {offsets = [0, 32], sizes = [8, 512], strides = [1, 1]} : vector<8x546xf32> to vector<8x512xf32>
    %176 = vector.extract_strided_slice %1 {offsets = [6, 0], sizes = [1, 512], strides = [1, 1]} : vector<9x512xf32> to vector<1x512xf32>
    %177 = vector.broadcast %176 : vector<1x512xf32> to vector<8x512xf32>
    %178 = arith.mulf %175, %177 : vector<8x512xf32>
    %179 = vector.extract_strided_slice %122 {offsets = [0, 6], sizes = [8, 1], strides = [1, 1]} : vector<8x9xf32> to vector<8x1xf32>
    %180 = vector.broadcast %179 : vector<8x1xf32> to vector<8x512xf32>
    %181 = arith.mulf %178, %180 : vector<8x512xf32>
    %182 = arith.addf %174, %181 : vector<8x512xf32>
    %183 = vector.extract_strided_slice %125 {offsets = [0, 33], sizes = [8, 512], strides = [1, 1]} : vector<8x546xf32> to vector<8x512xf32>
    %184 = vector.extract_strided_slice %1 {offsets = [7, 0], sizes = [1, 512], strides = [1, 1]} : vector<9x512xf32> to vector<1x512xf32>
    %185 = vector.broadcast %184 : vector<1x512xf32> to vector<8x512xf32>
    %186 = arith.mulf %183, %185 : vector<8x512xf32>
    %187 = vector.extract_strided_slice %122 {offsets = [0, 7], sizes = [8, 1], strides = [1, 1]} : vector<8x9xf32> to vector<8x1xf32>
    %188 = vector.broadcast %187 : vector<8x1xf32> to vector<8x512xf32>
    %189 = arith.mulf %186, %188 : vector<8x512xf32>
    %190 = arith.addf %182, %189 : vector<8x512xf32>
    %191 = vector.extract_strided_slice %125 {offsets = [0, 34], sizes = [8, 512], strides = [1, 1]} : vector<8x546xf32> to vector<8x512xf32>
    %192 = vector.extract_strided_slice %1 {offsets = [8, 0], sizes = [1, 512], strides = [1, 1]} : vector<9x512xf32> to vector<1x512xf32>
    %193 = vector.broadcast %192 : vector<1x512xf32> to vector<8x512xf32>
    %194 = arith.mulf %191, %193 : vector<8x512xf32>
    %195 = vector.extract_strided_slice %122 {offsets = [0, 8], sizes = [8, 1], strides = [1, 1]} : vector<8x9xf32> to vector<8x1xf32>
    %196 = vector.broadcast %195 : vector<8x1xf32> to vector<8x512xf32>
    %197 = arith.mulf %194, %196 : vector<8x512xf32>
    %198 = arith.addf %190, %197 : vector<8x512xf32>
    %199 = vector.extract_strided_slice %123 {offsets = [0, 0], sizes = [8, 1], strides = [1, 1]} : vector<8x2xf32> to vector<8x1xf32>
    %200 = vector.broadcast %199 : vector<8x1xf32> to vector<8x512xf32>
    %201 = arith.mulf %198, %200 : vector<8x512xf32>
    %202 = vector.extract_strided_slice %123 {offsets = [0, 1], sizes = [8, 1], strides = [1, 1]} : vector<8x2xf32> to vector<8x1xf32>
    %203 = vector.broadcast %202 : vector<8x1xf32> to vector<8x512xf32>
    %204 = arith.addf %201, %203 : vector<8x512xf32>
    %c0_16 = arith.constant 0 : index
    %c36 = arith.constant 36 : index
    %205 = vector.load %arg3[%c0_16, %c36] : memref<8x38xf32, #tpu.memory_space<vmem>>, vector<8x2xf32>
    %c0_17 = arith.constant 0 : index
    %c28 = arith.constant 28 : index
    %206 = vector.load %arg3[%c0_17, %c28] : memref<8x38xf32, #tpu.memory_space<vmem>>, vector<8x4xf32>
    %cst_18 = arith.constant 0.000000e+00 : f32
    %207 = vector.broadcast %cst_18 : f32 to vector<8x512xf32>
    %208 = vector.extract_strided_slice %204 {offsets = [0, 0], sizes = [1, 512], strides = [1, 1]} : vector<8x512xf32> to vector<1x512xf32>
    %209 = vector.extract_strided_slice %206 {offsets = [0, 0], sizes = [8, 1], strides = [1, 1]} : vector<8x4xf32> to vector<8x1xf32>
    %210 = vector.broadcast %208 : vector<1x512xf32> to vector<8x512xf32>
    %211 = vector.broadcast %209 : vector<8x1xf32> to vector<8x512xf32>
    %212 = arith.mulf %210, %211 : vector<8x512xf32>
    %213 = arith.addf %207, %212 : vector<8x512xf32>
    %214 = vector.extract_strided_slice %204 {offsets = [1, 0], sizes = [1, 512], strides = [1, 1]} : vector<8x512xf32> to vector<1x512xf32>
    %215 = vector.extract_strided_slice %206 {offsets = [0, 1], sizes = [8, 1], strides = [1, 1]} : vector<8x4xf32> to vector<8x1xf32>
    %216 = vector.broadcast %214 : vector<1x512xf32> to vector<8x512xf32>
    %217 = vector.broadcast %215 : vector<8x1xf32> to vector<8x512xf32>
    %218 = arith.mulf %216, %217 : vector<8x512xf32>
    %219 = arith.addf %213, %218 : vector<8x512xf32>
    %220 = vector.extract_strided_slice %204 {offsets = [2, 0], sizes = [1, 512], strides = [1, 1]} : vector<8x512xf32> to vector<1x512xf32>
    %221 = vector.extract_strided_slice %206 {offsets = [0, 2], sizes = [8, 1], strides = [1, 1]} : vector<8x4xf32> to vector<8x1xf32>
    %222 = vector.broadcast %220 : vector<1x512xf32> to vector<8x512xf32>
    %223 = vector.broadcast %221 : vector<8x1xf32> to vector<8x512xf32>
    %224 = arith.mulf %222, %223 : vector<8x512xf32>
    %225 = arith.addf %219, %224 : vector<8x512xf32>
    %226 = vector.extract_strided_slice %204 {offsets = [3, 0], sizes = [1, 512], strides = [1, 1]} : vector<8x512xf32> to vector<1x512xf32>
    %227 = vector.extract_strided_slice %206 {offsets = [0, 3], sizes = [8, 1], strides = [1, 1]} : vector<8x4xf32> to vector<8x1xf32>
    %228 = vector.broadcast %226 : vector<1x512xf32> to vector<8x512xf32>
    %229 = vector.broadcast %227 : vector<8x1xf32> to vector<8x512xf32>
    %230 = arith.mulf %228, %229 : vector<8x512xf32>
    %231 = arith.addf %225, %230 : vector<8x512xf32>
    %c0_19 = arith.constant 0 : index
    %c32 = arith.constant 32 : index
    %232 = vector.load %arg3[%c0_19, %c32] : memref<8x38xf32, #tpu.memory_space<vmem>>, vector<8x4xf32>
    %cst_20 = arith.constant 0.000000e+00 : f32
    %233 = vector.broadcast %cst_20 : f32 to vector<8x512xf32>
    %234 = vector.extract_strided_slice %121 {offsets = [0, 0], sizes = [1, 512], strides = [1, 1]} : vector<8x512xf32> to vector<1x512xf32>
    %235 = vector.extract_strided_slice %232 {offsets = [0, 0], sizes = [8, 1], strides = [1, 1]} : vector<8x4xf32> to vector<8x1xf32>
    %236 = vector.broadcast %234 : vector<1x512xf32> to vector<8x512xf32>
    %237 = vector.broadcast %235 : vector<8x1xf32> to vector<8x512xf32>
    %238 = arith.mulf %236, %237 : vector<8x512xf32>
    %239 = arith.addf %233, %238 : vector<8x512xf32>
    %240 = vector.extract_strided_slice %121 {offsets = [1, 0], sizes = [1, 512], strides = [1, 1]} : vector<8x512xf32> to vector<1x512xf32>
    %241 = vector.extract_strided_slice %232 {offsets = [0, 1], sizes = [8, 1], strides = [1, 1]} : vector<8x4xf32> to vector<8x1xf32>
    %242 = vector.broadcast %240 : vector<1x512xf32> to vector<8x512xf32>
    %243 = vector.broadcast %241 : vector<8x1xf32> to vector<8x512xf32>
    %244 = arith.mulf %242, %243 : vector<8x512xf32>
    %245 = arith.addf %239, %244 : vector<8x512xf32>
    %246 = vector.extract_strided_slice %121 {offsets = [2, 0], sizes = [1, 512], strides = [1, 1]} : vector<8x512xf32> to vector<1x512xf32>
    %247 = vector.extract_strided_slice %232 {offsets = [0, 2], sizes = [8, 1], strides = [1, 1]} : vector<8x4xf32> to vector<8x1xf32>
    %248 = vector.broadcast %246 : vector<1x512xf32> to vector<8x512xf32>
    %249 = vector.broadcast %247 : vector<8x1xf32> to vector<8x512xf32>
    %250 = arith.mulf %248, %249 : vector<8x512xf32>
    %251 = arith.addf %245, %250 : vector<8x512xf32>
    %252 = vector.extract_strided_slice %121 {offsets = [3, 0], sizes = [1, 512], strides = [1, 1]} : vector<8x512xf32> to vector<1x512xf32>
    %253 = vector.extract_strided_slice %232 {offsets = [0, 3], sizes = [8, 1], strides = [1, 1]} : vector<8x4xf32> to vector<8x1xf32>
    %254 = vector.broadcast %252 : vector<1x512xf32> to vector<8x512xf32>
    %255 = vector.broadcast %253 : vector<8x1xf32> to vector<8x512xf32>
    %256 = arith.mulf %254, %255 : vector<8x512xf32>
    %257 = arith.addf %251, %256 : vector<8x512xf32>
    %258 = arith.addf %231, %257 : vector<8x512xf32>
    %259 = vector.extract_strided_slice %205 {offsets = [0, 0], sizes = [8, 1], strides = [1, 1]} : vector<8x2xf32> to vector<8x1xf32>
    %260 = vector.broadcast %259 : vector<8x1xf32> to vector<8x512xf32>
    %261 = arith.mulf %258, %260 : vector<8x512xf32>
    %262 = vector.extract_strided_slice %205 {offsets = [0, 1], sizes = [8, 1], strides = [1, 1]} : vector<8x2xf32> to vector<8x1xf32>
    %263 = vector.broadcast %262 : vector<8x1xf32> to vector<8x512xf32>
    %264 = arith.addf %261, %263 : vector<8x512xf32>
    %cst_21 = arith.constant 0.000000e+00 : f32
    %cst_22 = arith.constant 6.000000e+00 : f32
    %265 = vector.broadcast %cst_21 : f32 to vector<8x512xf32>
    %266 = arith.maximumf %265, %264 : vector<8x512xf32>
    %267 = vector.broadcast %cst_22 : f32 to vector<8x512xf32>
    %268 = arith.minimumf %267, %266 : vector<8x512xf32>
    %c0_23 = arith.constant 0 : index
    %c0_24 = arith.constant 0 : index
    %269 = vector.load %arg4[%c0_23, %c0_24] : memref<8x512xf32, #tpu.memory_space<vmem>>, vector<8x512xf32>
    tpu.vector_store %arg4[%c0_23, %c0_24], %268 {strides = array<i32>} : memref<8x512xf32, #tpu.memory_space<vmem>>, vector<8x512xf32>,
    return
  }
  func.func @transform_0(%arg0: i32) -> (i32, i32) {
    %c0_i32 = arith.constant 0 : i32
    %c0_i32_0 = arith.constant 0 : i32
    return %c0_i32, %arg0 : i32, i32
  }
  func.func @transform_1(%arg0: i32) -> (i32, i32) {
    %c0_i32 = arith.constant 0 : i32
    %c0_i32_0 = arith.constant 0 : i32
    %c0_i32_1 = arith.constant 0 : i32
    return %c0_i32, %c0_i32_0 : i32, i32
  }
  func.func @transform_2(%arg0: i32) -> (i32, i32) {
    %c0_i32 = arith.constant 0 : i32
    %c0_i32_0 = arith.constant 0 : i32
    %c0_i32_1 = arith.constant 0 : i32
    return %c0_i32, %c0_i32_0 : i32, i32
  }
  func.func @transform_3(%arg0: i32) -> (i32, i32) {
    %c0_i32 = arith.constant 0 : i32
    %c0_i32_0 = arith.constant 0 : i32
    return %c0_i32, %arg0 : i32, i32
  }
}

</mosaic_0001>

<bundles_post_ra>
// kernel: shuffle_block_forward.1
= control target key start
LH: loop header
LB: loop body
LE: loop exit
PB: predicated region body
PF: predicated region fallthrough
CT: control target
= control target key end

     0   :  { %v1353_v0 = vmov 0   ;;  %v1354_v2 = vmov 2   ;;  %v1355_v3 = vmov 4   ;;  %v1356_v4 = vmov 1   ;;  %s1359_s18 = smov 1   ;;  %s1364_s23 = smov 2   ;;  %s2307_s2 = inlined_call_operand.vmem [shape: f32[8,38], index: 2, kind: input, shape index: {}]   ;;  %s2308_s1 = inlined_call_operand.vmem [shape: f32[9,512], index: 1, kind: input, shape index: {}]   ;;  %s2309_s0 = inlined_call_operand.vmem [shape: f32[8,512], index: 0, kind: input, shape index: {}]   ;;  %s2310_s3 = inlined_call_operand.vmem [shape: f32[8,512], index: 3, kind: output, shape index: {}]  }
   0x1   :  { %1310 = vset.pattern.permute.xlu0 %v1353_v0  ;;  %v1430_v1 = vld [vmem:[%s2307_s2] sm:$0xff]  ;;  %1312 = vset.pattern.permute.xlu1 %v1354_v2  ;;  %v1357_v5 = vmov 3   ;;  %v1358_v6 = vmov 5   ;;  %v1440_v7 = vld [vmem:[%s2308_s1 + $0x8] sm:$0xff]  ;;  %v1360_v11 = vmov 7   ;;  %v1453_v12 = vld [vmem:[%s2308_s1 + $0x18] sm:$0xff] }
   0x2   :  { %33 = vperm.xlu0 %1310, %v1430_v1   ;;  %65 = vperm.xlu1 %1312, %v1430_v1   ;;  %v1445_v8 = vld [vmem:[%s2308_s1] sm:$0xff]  ;;  %v160_v9 = vperm.slane %v1440_v7, 1  ;;  %v1361_v13 = vmov 6   ;;  %v1459_v14 = vld [vmem:[%s2308_s1 + $0x10] sm:$0xff]  ;;  %v162_v15 = vperm.slane %v1453_v12, 1  ;;  %v1362_v17 = vmov 8  }
   0x3   :  { %1314 = vset.pattern.permute.xlu2 %v1355_v3  ;;  %v159_v10 = vperm.slane %v1445_v8, 1  ;;  %v161_v16 = vperm.slane %v1459_v14, 1  ;;  %v226_v18 = vperm.slane %v1445_v8, 2  ;;  %v228_v19 = vperm.slane %v1459_v14, 2  ;;  %s1365_s24 = smov 16   ;;  %s1367_s25 = smov 17  }
   0x4   :  { %93 = vperm.xlu2 %1314, %v1430_v1   ;;  %v1363_v20 = vmov 9   ;;  %v227_v21 = vperm.slane %v1440_v7, 2  ;;  %v229_v22 = vperm.slane %v1453_v12, 2  ;;  %v294_v23 = vperm.slane %v1440_v7, 3  ;;  %s1369_s26 = smov 18   ;;  %s1370_s27 = smov 32  }
   0x5   :  { %v295_v24 = vperm.slane %v1459_v14, 3  ;;  %v293_v25 = vperm.slane %v1445_v8, 3  ;;  %v1366_v26 = vmov 10   ;;  %v360_v27 = vperm.slane %v1445_v8, 4  ;;  %s1372_s28 = smov 33   ;;  %v1511_v51 = vld [vmem:[%s2309_s0] sm:$0xff] }
   0x6   :  { %v362_v28 = vperm.slane %v1459_v14, 4  ;;  %v296_v29 = vperm.slane %v1453_v12, 3  ;;  %v363_v30 = vperm.slane %v1453_v12, 4  ;;  %v427_v31 = vperm.slane %v1440_v7, 5  ;;  %v1516_v52 = vld [vmem:[%s2309_s0 + $0x8] sm:$0xff]  ;;  %v1521_v53 = vld [vmem:[%s2309_s0 + $0x10] sm:$0xff] }
   0x7   :  { %v1368_v32 = vmov 11   ;;  %v361_v33 = vperm.slane %v1440_v7, 4  ;;  %v428_v34 = vperm.slane %v1459_v14, 5  ;;  %v426_v35 = vperm.slane %v1445_v8, 5  ;;  %s1375_s13 = smov 34   ;;  %s1379_s19 = smov 112  }
   0x8   :  { %v493_v36 = vperm.slane %v1445_v8, 6  ;;  %v495_v37 = vperm.slane %v1459_v14, 6  ;;  %v1371_v38 = vmov 12   ;;  %v429_v39 = vperm.slane %v1453_v12, 5  ;;  %s1380_s20 = smov 111   ;;  %s1381_s21 = smov 110  }
   0x9   :  { %v496_v40 = vperm.slane %v1453_v12, 6  ;;  %v494_v42 = vperm.slane %v1440_v7, 6  ;;  %v561_v43 = vperm.slane %v1440_v7, 7  ;;  %v562_v44 = vperm.slane %v1459_v14, 7  ;;  %s1382_s22 = smov 96  }
   0xa   :  { %1311 = vset.pattern.permute.xlu0 %v1356_v4  ;;  %1313 = vset.pattern.permute.xlu1 %v1357_v5  ;;  %v1373_v47 = vmov 13   ;;  %v560_v48 = vperm.slane %v1445_v8, 7  ;;  %v27_v55 = vperm.slane %v1511_v51, 0  ;;  %v28_v56 = vperm.slane %v1516_v52, 0 }
   0xb   :  { %49 = vperm.xlu0 %1311, %v1430_v1   ;;  %81 = vperm.xlu1 %1313, %v1430_v1   ;;  %v29_v57 = vperm.slane %v1521_v53, 0  ;;  %v60_v58 = vperm.slane %v1511_v51, 2  ;;  %v44_v59 = vperm.slane %v1511_v51, 1  ;;  %v45_v60 = vperm.slane %v1516_v52, 1 }
   0xc   :  { %1315 = vset.pattern.permute.xlu2 %v1358_v6  ;;  %v46_v61 = vperm.slane %v1521_v53, 1  ;;  %v563_v62 = vperm.slane %v1453_v12, 7  ;;  %v61_v63 = vperm.slane %v1516_v52, 2  ;;  %v62_v0 = vperm.slane %v1521_v53, 2 }
   0xd   :  { %101 = vperm.xlu2 %1315, %v1430_v1   ;;  %v76_v2 = vperm.slane %v1511_v51, 3  ;;  %v77_v3 = vperm.slane %v1516_v52, 3  ;;  %v78_v4 = vperm.slane %v1521_v53, 3  ;;  %vm309_vm0 = vcmask 130048  }
   0xe   :  { %vm128_vm1 = vcmask 138240   ;;  %vm442_vm2 = vcmask 146432   ;;  %vm509_vm3 = vcmask 261120   ;;  %vm576_vm4 = vcmask 269312  }
   0xf   :  { %vm175_vm5 = vcmask 7168   ;;  %vm242_vm6 = vcmask 15360   ;;  %vm643_vm7 = vcmask 277504   ;;  %vm213_vm8 = vcmask 1039360  }
  0x10   :  { %vm280_vm9 = vcmask 1031168   ;;  %vm347_vm10 = vcmask 916480   ;;  %vm413_vm11 = vcmask 908288   ;;  %vm480_vm12 = vcmask 900096  }
  0x11   :  { %vm547_vm13 = vcmask 785408   ;;  %vm614_vm14 = vcmask 777216   ;;  %vm681_vm15 = vcmask 769024  }
  0x13   :  { %169 = vrot.lane.b32.xlu1 %v160_v9, %s1359_s18  ;;  %167 = vrot.lane.b32.xlu0 %v159_v10, %s1359_s18 }
  0x14   :  { %1317 = vset.pattern.permute.xlu1 %v1360_v11  ;;  %1319 = vset.pattern.permute.xlu0 %v1363_v20 }
  0x15   :  { %1316 = vset.pattern.permute.xlu2 %v1361_v13 }
  0x16   :  { %148 = vperm.xlu2 %1316, %v1430_v1  }
  0x1b   :  { %190 = vperm.xlu1 %1317, %v1430_v1   ;;  %173 = vrot.lane.b32.xlu0 %v162_v15, %s1359_s18 }
  0x1e   :  { %171 = vrot.lane.b32.xlu2 %v161_v16, %s1359_s18  ;;  %s1378_s18 = smov 126  }
  0x1f   :  { %1318 = vset.pattern.permute.xlu2 %v1362_v17 }
  0x23   :  { %234 = vrot.lane.b32.xlu1 %v226_v18, %s1364_s23  ;;  %238 = vrot.lane.b32.xlu0 %v228_v19, %s1364_s23 }
  0x26   :  { %236 = vrot.lane.b32.xlu2 %v227_v21, %s1364_s23 }
  0x2b   :  { %240 = vrot.lane.b32.xlu1 %v229_v22, %s1364_s23  ;;  %303 = vrot.lane.b32.xlu0 %v294_v23, %s1365_s24  ;;  %s1384_s23 = smov 95  }
  0x2e   :  { %257 = vperm.xlu2 %1318, %v1430_v1  }
  0x33   :  { %305 = vrot.lane.b32.xlu1 %v295_v24, %s1365_s24  ;;  %324 = vperm.xlu0 %1319, %v1430_v1  }
  0x36   :  { %301 = vrot.lane.b32.xlu2 %v293_v25, %s1365_s24 }
  0x37   :  { %1320 = vset.pattern.permute.xlu2 %v1366_v26 }
  0x3b   :  { %368 = vrot.lane.b32.xlu1 %v360_v27, %s1367_s25  ;;  %372 = vrot.lane.b32.xlu0 %v362_v28, %s1367_s25 }
  0x3c   :  { %1321 = vset.pattern.permute.xlu0 %v1368_v32 }
  0x3e   :  { %307 = vrot.lane.b32.xlu2 %v296_v29, %s1365_s24  ;;  %s1385_s24 = smov 94  }
  0x43   :  { %374 = vrot.lane.b32.xlu1 %v363_v30, %s1367_s25  ;;  %436 = vrot.lane.b32.xlu0 %v427_v31, %s1369_s26  ;;  %v1551_v30 = vld [vmem:[%s2309_s0 + $0x18] sm:$0xff] }
  0x46   :  { %370 = vrot.lane.b32.xlu2 %v361_v33, %s1367_s25 }
  0x4b   :  { %438 = vrot.lane.b32.xlu1 %v428_v34, %s1369_s26  ;;  %457 = vperm.xlu0 %1321, %v1430_v1   ;;  %v47_v34 = vperm.slane %v1551_v30, 1 }
  0x4e   :  { %390 = vperm.xlu2 %1320, %v1430_v1  }
  0x53   :  { %501 = vrot.lane.b32.xlu1 %v493_v36, %s1370_s27  ;;  %505 = vrot.lane.b32.xlu0 %v495_v37, %s1370_s27 }
  0x54   :  { %1323 = vset.pattern.permute.xlu0 %v1373_v47 }
  0x56   :  { %434 = vrot.lane.b32.xlu2 %v426_v35, %s1369_s26 }
  0x57   :  { %1322 = vset.pattern.permute.xlu2 %v1371_v38 }
  0x5b   :  { %507 = vrot.lane.b32.xlu1 %v496_v40, %s1370_s27  ;;  %570 = vrot.lane.b32.xlu0 %v561_v43, %s1372_s28  ;;  %v30_v40 = vperm.slane %v1551_v30, 0 }
  0x5e   :  { %440 = vrot.lane.b32.xlu2 %v429_v39, %s1369_s26  ;;  %v1491_v41 = vpop.permute.xlu2 %93 }
  0x63   :  { %572 = vrot.lane.b32.xlu1 %v562_v44, %s1372_s28 }
  0x66   :  { %503 = vrot.lane.b32.xlu2 %v494_v42, %s1370_s27 }
  0x67   :  { %v1497_v45 = vpop.permute.xlu2 %101 }
  0x6e   :  { %524 = vperm.xlu2 %1322, %v1430_v1  }
  0x70   :  { %v1501_v46 = vpop.permute.xlu2 %148 }
  0x74   :  { %v1504_v49 = vpop.permute.xlu0 %33  ;;  %v1506_v50 = vpop.permute.xlu1 %65 }
  0x75   :  { %v36_v5 = vmul.f32 %v1504_v49, %v27_v55  ;;  %v37_v6 = vmul.f32 %v1504_v49, %v28_v56  ;;  %v38_v9 = vmul.f32 %v1504_v49, %v29_v57  ;;  %v68_v13 = vmul.f32 %v1506_v50, %v60_v58 }
  0x76   :  { %568 = vrot.lane.b32.xlu2 %v560_v48, %s1372_s28  ;;  %v69_v18 = vmul.f32 %v1506_v50, %v61_v63  ;;  %v70_v19 = vmul.f32 %v1506_v50, %v62_v0  ;;  %v1374_v48 = vmov 14  }
  0x77   :  { %1324 = vset.pattern.permute.xlu2 %v1374_v48 }
  0x78   :  { %v1524_v54 = vpop.permute.xlu2 %171 }
  0x7d   :  { %v50_v10 = vpop.permute.xlu0 %49  ;;  %v82_v11 = vpop.permute.xlu1 %81 }
  0x7e   :  { %v52_v15 = vmul.f32 %v50_v10, %v44_v59  ;;  %v53_v16 = vmul.f32 %v50_v10, %v45_v60  ;;  %v54_v17 = vmul.f32 %v50_v10, %v46_v61  ;;  %574 = vrot.lane.b32.xlu2 %v563_v62, %s1372_s28  ;;  %v84_v20 = vmul.f32 %v82_v11, %v76_v2 }
  0x7f   :  { %v85_v21 = vmul.f32 %v82_v11, %v77_v3  ;;  %v86_v25 = vmul.f32 %v82_v11, %v78_v4  ;;  %v55_v55 = vmul.f32 %v50_v10, %v47_v34  ;;  %v39_v59 = vmul.f32 %v1504_v49, %v30_v40  ;;  %v1351_v10 = vld [vmem:[%s2308_s1 + $0x28] ss:$0 sm:$0xff] }
  0x80   :  { %v56_v22 = vadd.f32 %v52_v15, %v36_v5  ;;  %v57_v23 = vadd.f32 %v53_v16, %v37_v6  ;;  %v58_v24 = vadd.f32 %v54_v17, %v38_v9  ;;  %v1546_v26 = vpop.permute.xlu2 %236  ;;  %v63_v60 = vperm.slane %v1551_v30, 2 }
  0x81   :  { %v59_v0 = vadd.f32 %v55_v55, %v39_v59  ;;  %v79_v2 = vperm.slane %v1551_v30, 3  ;;  %v1376_v55 = vmov 15  }
  0x82   :  { %v72_v27 = vadd.f32 %v68_v13, %v56_v22  ;;  %v73_v28 = vadd.f32 %v69_v18, %v57_v23  ;;  %v74_v29 = vadd.f32 %v70_v19, %v58_v24  ;;  %v71_v5 = vmul.f32 %v1506_v50, %v63_v60  ;;  %v1348_v13 = vld [vmem:[%s2308_s1 + $0x20] ss:$0 sm:$0xff]  ;;  %v1349_v18 = vld [vmem:[%s2308_s1 + $0x30] ss:$0 sm:$0xff]  ;;  %v1350_v19 = vld [vmem:[%s2308_s1 + $0x38] ss:$0 sm:$0xff] }
  0x83   :  { %v87_v9 = vmul.f32 %v82_v11, %v79_v2  ;;  %s1377_s1 = smov 127  }
  0x84   :  { %v90_v31 = vadd.f32 %v86_v25, %v74_v29  ;;  %v89_v32 = vadd.f32 %v85_v21, %v73_v28  ;;  %v88_v33 = vadd.f32 %v84_v20, %v72_v27  ;;  %v75_v6 = vadd.f32 %v71_v5, %v59_v0 }
  0x85   :  { %v1554_v35 = vpop.permute.xlu1 %169  ;;  %v1556_v36 = vpop.permute.xlu0 %167 }
  0x86   :  { %v98_v37 = vmul.f32 %v1491_v41, %v90_v31  ;;  %v97_v38 = vmul.f32 %v1491_v41, %v89_v32  ;;  %v96_v39 = vmul.f32 %v1491_v41, %v88_v33  ;;  %v91_v15 = vadd.f32 %v87_v9, %v75_v6 }
  0x87   :  { %v1678_v5 = vsel %vm175_vm5, %v1554_v35, %v1524_v54 }
  0x88   :  { %v106_v42 = vadd.f32 %v1497_v45, %v98_v37  ;;  %v105_v43 = vadd.f32 %v1497_v45, %v97_v38  ;;  %v104_v44 = vadd.f32 %v1497_v45, %v96_v39  ;;  %v1565_v47 = vpop.permute.xlu2 %257  ;;  %v99_v11 = vmul.f32 %v1491_v41, %v91_v15  ;;  %2322 = vst [vmem:[#allocation3_spill] sm:$0xff] %v1678_v5 }
  0x8a   :  { %v110_v56 = vmax.f32 %v106_v42, 0.0  ;;  %v109_v57 = vmax.f32 %v105_v43, 0.0  ;;  %v108_v58 = vmax.f32 %v104_v44, 0.0  ;;  %v107_v20 = vadd.f32 %v1497_v45, %v99_v11 }
  0x8c   :  { %v114_v61 = vmin.f32 %v110_v56, 6.0  ;;  %v113_v62 = vmin.f32 %v109_v57, 6.0  ;;  %v112_v63 = vmin.f32 %v108_v58, 6.0  ;;  %v111_v41 = vmax.f32 %v107_v20, 0.0 }
  0x8d   :  { %v1570_v3 = vpop.permute.xlu1 %190  ;;  %v1572_v4 = vpop.permute.xlu0 %173 }
  0x8e   :  { %124 = vrot.lane.b32.xlu0 %v114_v61, %s1367_s25  ;;  %122 = vrot.lane.b32.xlu2 %v113_v62, %s1367_s25  ;;  %v115_v24 = vmin.f32 %v111_v41, 6.0 }
  0x8f   :  { %120 = vrot.lane.b32.xlu1 %v112_v63, %s1367_s25 }
  0x90   :  { %v1578_v49 = vpop.permute.xlu2 %301 }
  0x95   :  { %v1586_v16 = vpop.permute.xlu1 %234  ;;  %v1588_v17 = vpop.permute.xlu0 %238 }
  0x96   :  { %591 = vperm.xlu0 %1323, %v1430_v1   ;;  %637 = vrot.lane.b32.xlu2 %v1351_v10, %s1375_s13  ;;  %v1686_v10 = vsel %vm175_vm5, %v1556_v36, %v1554_v35 }
  0x97   :  { %635 = vrot.lane.b32.xlu1 %v1348_v13, %s1375_s13 }
  0x98   :  { %v1591_v50 = vpop.permute.xlu2 %307 }
  0x9d   :  { %v1601_v21 = vpop.permute.xlu1 %240  ;;  %v1603_v22 = vpop.permute.xlu0 %303 }
  0x9e   :  { %639 = vrot.lane.b32.xlu0 %v1349_v18, %s1375_s13  ;;  %658 = vperm.xlu2 %1324, %v1430_v1  }
  0x9f   :  { %641 = vrot.lane.b32.xlu1 %v1350_v19, %s1375_s13 }
  0xa0   :  { %v1606_v23 = vpop.permute.xlu2 %370 }
  0xa5   :  { %v1608_v25 = vpop.permute.xlu1 %305  ;;  %v1610_v27 = vpop.permute.xlu0 %324 }
  0xa6   :  { %v1615_v45 = vsel %vm309_vm0, %v1603_v22, %v1608_v25  ;;  %1325 = vset.pattern.permute.xlu2 %v1376_v55 }
  0xa7   :  { %126 = vrot.lane.b32.xlu1 %v115_v24, %s1367_s25  ;;  %695 = vperm.xlu2 %1325, %v1430_v1   ;;  %v1707_v24 = vsel %vm242_vm6, %v1586_v16, %v1546_v26 }
  0xa8   :  { %v1618_v28 = vpop.permute.xlu2 %390  ;;  %2323 = vst [vmem:[#allocation4_spill] sm:$0xff] %v1707_v24 }
  0xad   :  { %v1620_v29 = vpop.permute.xlu1 %368  ;;  %v1622_v31 = vpop.permute.xlu0 %372 }
  0xae   :  { %v1627_v32 = vsel %vm128_vm1, %v1606_v23, %v1622_v31 }
  0xb0   :  { %v1629_v33 = vpop.permute.xlu2 %434 }
  0xb5   :  { %v1631_v34 = vpop.permute.xlu1 %374  ;;  %v1633_v37 = vpop.permute.xlu0 %436 }
  0xb8   :  { %v1642_v40 = vpop.permute.xlu2 %440 }
  0xbd   :  { %v1635_v38 = vpop.permute.xlu1 %438  ;;  %v1644_v42 = vpop.permute.xlu0 %457 }
  0xbe   :  { %v1640_v39 = vsel %vm442_vm2, %v1633_v37, %v1635_v38 }
  0xc0   :  { %v1648_v44 = vpop.permute.xlu2 %503 }
  0xc5   :  { %v1646_v43 = vpop.permute.xlu1 %501  ;;  %v1650_v48 = vpop.permute.xlu0 %505 }
  0xc6   :  { %v1655_v56 = vsel %vm509_vm3, %v1648_v44, %v1650_v48 }
  0xc8   :  { %v1669_v61 = vpop.permute.xlu2 %524 }
  0xcd   :  { %v1658_v57 = vpop.permute.xlu1 %507  ;;  %v1660_v58 = vpop.permute.xlu0 %570 }
  0xd0   :  { %v1671_v62 = vpop.permute.xlu2 %568 }
  0xd5   :  { %v1662_v59 = vpop.permute.xlu1 %572 }
  0xd6   :  { %v1667_v60 = vsel %vm576_vm4, %v1660_v58, %v1662_v59 }
  0xd7   :  { %2321 = vst [vmem:[#allocation2_spill] sm:$0xff] %v1667_v60 }
  0xd8   :  { %v1673_v63 = vpop.permute.xlu2 %574 }
  0xe8   :  { %v123_v0 = vpop.permute.xlu2 %122 }
 0x100   :  { %v125_v2 = vpop.permute.xlu0 %124 }
 0x101   :  { %v1681_v6 = vsel %vm128_vm1, %v123_v0, %v125_v2  ;;  %v121_v9 = vpop.permute.xlu1 %120 }
 0x102   :  { %v1689_v13 = vsel %vm128_vm1, %v121_v9, %v123_v0  ;;  %v1692_v15 = vsel %vm128_vm1, 0.0, %v121_v9  ;;  %v186_v11 = vmul.f32 %v1678_v5, %v1681_v6 }
 0x103   :  { %v184_v18 = vmul.f32 %v1556_v36, %v1692_v15  ;;  %v185_v19 = vmul.f32 %v1686_v10, %v1689_v13  ;;  %v252_v55 = vmul.f32 %v1707_v24, %v1689_v13 }
 0x104   :  { %v195_v20 = vmul.f32 %v1570_v3, %v186_v11 }
 0x105   :  { %v193_v35 = vmul.f32 %v1570_v3, %v184_v18  ;;  %v194_v41 = vmul.f32 %v1570_v3, %v185_v19  ;;  %v261_v9 = vmul.f32 %v1565_v47, %v252_v55  ;;  %v1722_v19 = vsel %vm175_vm5, %v1524_v54, %v1572_v4 }
 0x106   :  { %207 = vrot.lane.b32.xlu1 %v195_v20, %s1377_s1 }
 0x107   :  { %203 = vrot.lane.b32.xlu2 %v193_v35, %s1377_s1  ;;  %205 = vrot.lane.b32.xlu0 %v194_v41, %s1377_s1 }
 0x109   :  { %v1713_v0 = vpop.permute.xlu1 %635 }
 0x10a   :  { %2324 = vst [vmem:[#allocation5_spill] sm:$0xff] %v1713_v0 }
 0x10e   :  { %272 = vrot.lane.b32.xlu1 %v261_v9, %s1378_s18 }
 0x111   :  { %v1717_v11 = vpop.permute.xlu1 %641 }
 0x119   :  { %v127_v18 = vpop.permute.xlu1 %126 }
 0x11a   :  { %v1725_v20 = vsel %vm128_vm1, %v125_v2, %v127_v18  ;;  %v1728_v35 = vsel %vm128_vm1, %v127_v18, 0.0  ;;  %v1745_v2 = vsel %vm242_vm6, %v1546_v26, %v1588_v17  ;;  %v318_v18 = vmul.f32 %v1578_v49, %v1692_v15 }
 0x11b   :  { %v255_v41 = vmul.f32 %v1601_v21, %v1728_v35  ;;  %v188_v55 = vmul.f32 %v1572_v4, %v1728_v35  ;;  %v187_v9 = vmul.f32 %v1722_v19, %v1725_v20  ;;  %v1761_v26 = vsel %vm242_vm6, %v1588_v17, %v1601_v21 }
 0x11d   :  { %v264_v24 = vmul.f32 %v1565_v47, %v255_v41  ;;  %v197_v54 = vmul.f32 %v1570_v3, %v188_v55  ;;  %v196_v5 = vmul.f32 %v1570_v3, %v187_v9  ;;  %v251_v41 = vmul.f32 %v1586_v16, %v1692_v15 }
 0x11e   :  { %v253_v3 = vmul.f32 %v1745_v2, %v1681_v6  ;;  %v1767_v9 = vsel %vm309_vm0, %v1578_v49, %v1603_v22  ;;  %v1783_v22 = vsel %vm128_vm1, %v1620_v29, %v1606_v23 }
 0x11f   :  { %278 = vrot.lane.b32.xlu1 %v264_v24, %s1378_s18  ;;  %211 = vrot.lane.b32.xlu0 %v197_v54, %s1377_s1  ;;  %v327_v24 = vmul.f32 %v1610_v27, %v318_v18  ;;  %v260_v55 = vmul.f32 %v1565_v47, %v251_v41  ;;  %v320_v54 = vmul.f32 %v1615_v45, %v1681_v6 }
 0x120   :  { %209 = vrot.lane.b32.xlu2 %v196_v5, %s1377_s1  ;;  %v262_v5 = vmul.f32 %v1565_v47, %v253_v3  ;;  %v254_v18 = vmul.f32 %v1761_v26, %v1725_v20  ;;  %v319_v41 = vmul.f32 %v1767_v9, %v1689_v13 }
 0x121   :  { %v329_v3 = vmul.f32 %v1610_v27, %v320_v54 }
 0x122   :  { %v263_v17 = vmul.f32 %v1565_v47, %v254_v18  ;;  %v385_v47 = vmul.f32 %v1783_v22, %v1689_v13 }
 0x124   :  { %v394_v18 = vmul.f32 %v1618_v28, %v385_v47 }
 0x127   :  { %337 = vrot.lane.b32.xlu1 %v327_v24, %s1379_s19  ;;  %270 = vrot.lane.b32.xlu0 %v260_v55, %s1378_s18  ;;  %v328_v24 = vmul.f32 %v1610_v27, %v319_v41  ;;  %v1789_v55 = vsel %vm309_vm0, %v1608_v25, %v1591_v50  ;;  %v388_v25 = vmul.f32 %v1631_v34, %v1728_v35 }
 0x128   :  { %274 = vrot.lane.b32.xlu2 %v262_v5, %s1378_s18  ;;  %v322_v5 = vmul.f32 %v1591_v50, %v1728_v35  ;;  %v321_v54 = vmul.f32 %v1789_v55, %v1725_v20 }
 0x12a   :  { %v331_v23 = vmul.f32 %v1610_v27, %v322_v5  ;;  %v330_v41 = vmul.f32 %v1610_v27, %v321_v54  ;;  %v1817_v5 = vsel %vm128_vm1, %v1622_v31, %v1631_v34  ;;  %v1823_v54 = vsel %vm442_vm2, %v1629_v33, %v1633_v37 }
 0x12b   :  { %v1840_v37 = vsel %vm442_vm2, %v1635_v38, %v1642_v40  ;;  %v1856_v38 = vsel %vm509_vm3, %v1646_v43, %v1648_v44  ;;  %v1873_v44 = vsel %vm509_vm3, %v1650_v48, %v1658_v57 }
 0x12f   :  { %341 = vrot.lane.b32.xlu1 %v329_v3, %s1379_s19  ;;  %276 = vrot.lane.b32.xlu0 %v263_v17, %s1378_s18  ;;  %v384_v3 = vmul.f32 %v1620_v29, %v1692_v15  ;;  %v386_v17 = vmul.f32 %v1627_v32, %v1681_v6 }
 0x130   :  { %339 = vrot.lane.b32.xlu2 %v328_v24, %s1379_s19  ;;  %v397_v24 = vmul.f32 %v1618_v28, %v388_v25 }
 0x131   :  { %v393_v27 = vmul.f32 %v1618_v28, %v384_v3  ;;  %v395_v47 = vmul.f32 %v1618_v28, %v386_v17  ;;  %v453_v17 = vmul.f32 %v1640_v39, %v1681_v6 }
 0x137   :  { %405 = vrot.lane.b32.xlu1 %v394_v18, %s1380_s20  ;;  %345 = vrot.lane.b32.xlu0 %v331_v23, %s1379_s19  ;;  %v451_v18 = vmul.f32 %v1629_v33, %v1692_v15  ;;  %v387_v23 = vmul.f32 %v1817_v5, %v1725_v20 }
 0x138   :  { %343 = vrot.lane.b32.xlu2 %v330_v41, %s1379_s19  ;;  %v452_v41 = vmul.f32 %v1823_v54, %v1689_v13 }
 0x139   :  { %v460_v25 = vmul.f32 %v1644_v42, %v451_v18  ;;  %v396_v31 = vmul.f32 %v1618_v28, %v387_v23  ;;  %v455_v28 = vmul.f32 %v1642_v40, %v1728_v35  ;;  %v519_v23 = vmul.f32 %v1856_v38, %v1689_v13 }
 0x13a   :  { %v461_v3 = vmul.f32 %v1644_v42, %v452_v41  ;;  %v518_v41 = vmul.f32 %v1646_v43, %v1692_v15 }
 0x13f   :  { %411 = vrot.lane.b32.xlu1 %v397_v24, %s1380_s20  ;;  %403 = vrot.lane.b32.xlu0 %v393_v27, %s1380_s20  ;;  %v454_v24 = vmul.f32 %v1840_v37, %v1725_v20  ;;  %v462_v27 = vmul.f32 %v1644_v42, %v453_v17 }
 0x140   :  { %407 = vrot.lane.b32.xlu2 %v395_v47, %s1380_s20  ;;  %v464_v47 = vmul.f32 %v1644_v42, %v455_v28  ;;  %v522_v28 = vmul.f32 %v1658_v57, %v1728_v35 }
 0x141   :  { %v463_v18 = vmul.f32 %v1644_v42, %v454_v24  ;;  %v520_v42 = vmul.f32 %v1655_v56, %v1681_v6  ;;  %v521_v24 = vmul.f32 %v1873_v44, %v1725_v20 }
 0x142   :  { %v531_v48 = vmul.f32 %v1669_v61, %v522_v28 }
 0x143   :  { %v529_v17 = vmul.f32 %v1669_v61, %v520_v42 }
 0x147   :  { %470 = vrot.lane.b32.xlu1 %v460_v25, %s1381_s21  ;;  %409 = vrot.lane.b32.xlu0 %v396_v31, %s1380_s20  ;;  %v528_v25 = vmul.f32 %v1669_v61, %v519_v23  ;;  %v527_v31 = vmul.f32 %v1669_v61, %v518_v41  ;;  %v530_v23 = vmul.f32 %v1669_v61, %v521_v24  ;;  %v1383_v41 = vmov 16  }
 0x148   :  { %472 = vrot.lane.b32.xlu2 %v461_v3, %s1381_s21  ;;  %v638_v3 = vpop.permute.xlu2 %637  ;;  %1326 = vset.pattern.permute.xlu0 %v1383_v41  ;;  %v652_v41 = vmul.f32 %v1713_v0, %v1692_v15 }
 0x14f   :  { %474 = vrot.lane.b32.xlu1 %v462_v27, %s1381_s21  ;;  %478 = vrot.lane.b32.xlu0 %v464_v47, %s1381_s21  ;;  %v592_v27 = vpop.permute.xlu0 %591  ;;  %v1883_v47 = vsel %vm576_vm4, %v1671_v62, %v1660_v58  ;;  %v1895_v58 = vsel %vm576_vm4, %v1662_v59, %v1673_v63 }
 0x150   :  { %476 = vrot.lane.b32.xlu2 %v463_v18, %s1381_s21  ;;  %v586_v18 = vmul.f32 %v1883_v47, %v1689_v13  ;;  %v588_v61 = vmul.f32 %v1895_v58, %v1725_v20 }
 0x152   :  { %v595_v42 = vmul.f32 %v592_v27, %v586_v18 }
 0x157   :  { %539 = vrot.lane.b32.xlu1 %v528_v25, %s1382_s22  ;;  %537 = vrot.lane.b32.xlu0 %v527_v31, %s1382_s22  ;;  %v659_v25 = vpop.permute.xlu2 %658  ;;  %v589_v31 = vmul.f32 %v1673_v63, %v1728_v35  ;;  %v640_v28 = vpop.permute.xlu0 %639 }
 0x158   :  { %541 = vrot.lane.b32.xlu2 %v529_v17, %s1382_s22  ;;  %v585_v17 = vmul.f32 %v1671_v62, %v1692_v15 }
 0x159   :  { %v598_v18 = vmul.f32 %v592_v27, %v589_v31  ;;  %v587_v31 = vmul.f32 %v1667_v60, %v1681_v6 }
 0x15a   :  { %v594_v24 = vmul.f32 %v592_v27, %v585_v17  ;;  %v661_v17 = vmul.f32 %v659_v25, %v652_v41 }
 0x15f   :  { %545 = vrot.lane.b32.xlu1 %v531_v48, %s1382_s22  ;;  %543 = vrot.lane.b32.xlu0 %v530_v23, %s1382_s22  ;;  %v597_v48 = vmul.f32 %v592_v27, %v588_v61  ;;  %v1904_v23 = vsel %vm643_vm7, %v638_v3, %v640_v28  ;;  %v1908_v59 = vpop.permute.xlu2 %695  ;;  %v596_v61 = vmul.f32 %v592_v27, %v587_v31 }
 0x160   :  { %606 = vrot.lane.b32.xlu2 %v595_v42, %s1384_s23  ;;  %2325 = vst [vmem:[#allocation6_spill] sm:$0xff] %v1904_v23  ;;  %v654_v42 = vmul.f32 %v1904_v23, %v1681_v6 }
 0x167   :  { %604 = vrot.lane.b32.xlu1 %v594_v24, %s1384_s23  ;;  %612 = vrot.lane.b32.xlu0 %v598_v18, %s1384_s23  ;;  %v1919_v24 = vsel %vm643_vm7, %v1713_v0, %v638_v3  ;;  %v663_v18 = vmul.f32 %v659_v25, %v654_v42  ;;  %v2317_v3 = vperm.slane %v1445_v8, 0  ;;  %v2316_v42 = vperm.slane %v1440_v7, 0  ;;  %v204_v31 = vpop.permute.xlu2 %203 }
 0x168   :  { %610 = vrot.lane.b32.xlu2 %v597_v48, %s1384_s23  ;;  %2326 = vst [vmem:[#allocation7_spill] sm:$0xff] %v1919_v24  ;;  %v1925_v48 = vsel %vm643_vm7, %v640_v28, %v1717_v11  ;;  %v653_v27 = vmul.f32 %v1919_v24, %v1689_v13 }
 0x169   :  { %2327 = vst [vmem:[#allocation8_spill] sm:$0xff] %v1925_v48  ;;  %v655_v41 = vmul.f32 %v1925_v48, %v1725_v20  ;;  %v144_v24 = vmul.f32 %v2316_v42, %v1689_v13  ;;  %v656_v13 = vmul.f32 %v1717_v11, %v1728_v35 }
 0x16a   :  { %v662_v0 = vmul.f32 %v659_v25, %v653_v27 }
 0x16b   :  { %v664_v28 = vmul.f32 %v659_v25, %v655_v41  ;;  %v665_v60 = vmul.f32 %v659_v25, %v656_v13 }
 0x16f   :  { %608 = vrot.lane.b32.xlu1 %v596_v61, %s1384_s23  ;;  %671 = vrot.lane.b32.xlu0 %v661_v17, %s1385_s24  ;;  %v2318_v61 = vperm.slane %v1459_v14, 0  ;;  %v1386_v17 = vmov 18  }
 0x170   :  { %675 = vrot.lane.b32.xlu2 %v663_v18, %s1385_s24  ;;  %1328 = vset.pattern.permute.xlu1 %v1386_v17  ;;  %v143_v18 = vmul.f32 %v2317_v3, %v1692_v15  ;;  %v152_v17 = vmul.f32 %v1501_v46, %v144_v24 }
 0x171   :  { %v145_v48 = vmul.f32 %v2318_v61, %v1681_v6 }
 0x172   :  { %v151_v41 = vmul.f32 %v1501_v46, %v143_v18 }
 0x177   :  { %673 = vrot.lane.b32.xlu1 %v662_v0, %s1385_s24  ;;  %677 = vrot.lane.b32.xlu0 %v664_v28, %s1385_s24  ;;  %v153_v0 = vmul.f32 %v1501_v46, %v145_v48 }
 0x178   :  { %716 = vrot.lane.b32.xlu2 %v1516_v52, %s1367_s25  ;;  %v208_v27 = vpop.permute.xlu1 %207 }
 0x179   :  { %v206_v15 = vpop.permute.xlu0 %205 }
 0x17a   :  { %v214_v42 = vsel %vm213_vm8, %v204_v31, %v206_v15  ;;  %v210_v6 = vpop.permute.xlu2 %209  ;;  %v215_v28 = vsel %vm213_vm8, %v206_v15, %v208_v27 }
 0x17b   :  { %v222_v3 = vadd.f32 %v214_v42, %v151_v41  ;;  %v216_v61 = vsel %vm213_vm8, %v208_v27, %v210_v6  ;;  %v223_v52 = vadd.f32 %v215_v28, %v152_v17  ;;  %v1387_v42 = vmov 17  }
 0x17c   :  { %v224_v23 = vadd.f32 %v216_v61, %v153_v0 }
 0x17f   :  { %679 = vrot.lane.b32.xlu1 %v665_v60, %s1385_s24  ;;  %703 = vperm.xlu0 %1326, %v1430_v1   ;;  %v142_v60 = vperm.slane %v1453_v12, 0 }
 0x180   :  { %720 = vrot.lane.b32.xlu2 %v1551_v30, %s1367_s25  ;;  %v273_v35 = vpop.permute.xlu1 %272 }
 0x181   :  { %v146_v25 = vmul.f32 %v142_v60, %v1725_v20 }
 0x182   :  { %v275_v24 = vpop.permute.xlu2 %274 }
 0x183   :  { %v282_v48 = vsel %vm280_vm9, %v273_v35, %v275_v24  ;;  %v154_v61 = vmul.f32 %v1501_v46, %v146_v25 }
 0x184   :  { %v290_v31 = vadd.f32 %v282_v48, %v223_v52 }
 0x187   :  { %714 = vrot.lane.b32.xlu1 %v1511_v51, %s1367_s25  ;;  %1327 = vset.pattern.permute.xlu0 %v1387_v42 }
 0x188   :  { %737 = vperm.xlu0 %1327, %v1430_v1  }
 0x18a   :  { %v340_v27 = vpop.permute.xlu2 %339 }
 0x18f   :  { %718 = vrot.lane.b32.xlu1 %v1521_v53, %s1367_s25 }
 0x191   :  { %v212_v30 = vpop.permute.xlu0 %211  ;;  %v279_v18 = vpop.permute.xlu1 %278 }
 0x192   :  { %v217_v51 = vsel %vm213_vm8, %v210_v6, %v212_v30  ;;  %v344_v28 = vpop.permute.xlu2 %343 }
 0x193   :  { %v225_v41 = vadd.f32 %v217_v51, %v154_v61 }
 0x197   :  { %754 = vperm.xlu1 %1328, %v1430_v1  }
 0x199   :  { %v271_v15 = vpop.permute.xlu0 %270  ;;  %v338_v17 = vpop.permute.xlu1 %337 }
 0x19a   :  { %v281_v13 = vsel %vm280_vm9, %v271_v15, %v273_v35  ;;  %v348_v20 = vsel %vm347_vm10, %v338_v17, %v340_v27  ;;  %v408_v35 = vpop.permute.xlu2 %407 }
 0x19b   :  { %v289_v0 = vadd.f32 %v281_v13, %v222_v3 }
 0x19d   :  { %v356_v53 = vadd.f32 %v348_v20, %v289_v0 }
 0x1a1   :  { %v277_v52 = vpop.permute.xlu0 %276  ;;  %v342_v48 = vpop.permute.xlu1 %341 }
 0x1a2   :  { %v283_v46 = vsel %vm280_vm9, %v275_v24, %v277_v52  ;;  %v284_v42 = vsel %vm280_vm9, %v277_v52, %v279_v18  ;;  %v349_v6 = vsel %vm347_vm10, %v340_v27, %v342_v48  ;;  %v350_v1 = vsel %vm347_vm10, %v342_v48, %v344_v28  ;;  %v473_v0 = vpop.permute.xlu2 %472 }
 0x1a3   :  { %v291_v25 = vadd.f32 %v283_v46, %v224_v23  ;;  %v292_v30 = vadd.f32 %v284_v42, %v225_v41  ;;  %v357_v61 = vadd.f32 %v349_v6, %v290_v31 }
 0x1a5   :  { %v358_v51 = vadd.f32 %v350_v1, %v291_v25 }
 0x1a9   :  { %v346_v15 = vpop.permute.xlu0 %345  ;;  %v406_v3 = vpop.permute.xlu1 %405 }
 0x1aa   :  { %v351_v17 = vsel %vm347_vm10, %v344_v28, %v346_v15  ;;  %v415_v13 = vsel %vm413_vm11, %v406_v3, %v408_v35  ;;  %v477_v41 = vpop.permute.xlu2 %476 }
 0x1ab   :  { %v359_v20 = vadd.f32 %v351_v17, %v292_v30  ;;  %v423_v24 = vadd.f32 %v415_v13, %v357_v61 }
 0x1b1   :  { %v404_v18 = vpop.permute.xlu0 %403  ;;  %v412_v52 = vpop.permute.xlu1 %411 }
 0x1b2   :  { %v414_v27 = vsel %vm413_vm11, %v404_v18, %v406_v3 }
 0x1b3   :  { %v422_v48 = vadd.f32 %v414_v27, %v356_v53  ;;  %v542_v27 = vpop.permute.xlu2 %541 }
 0x1b9   :  { %v410_v23 = vpop.permute.xlu0 %409  ;;  %v471_v31 = vpop.permute.xlu1 %470 }
 0x1ba   :  { %v416_v46 = vsel %vm413_vm11, %v408_v35, %v410_v23  ;;  %v417_v42 = vsel %vm413_vm11, %v410_v23, %v412_v52  ;;  %v481_v28 = vsel %vm480_vm12, %v471_v31, %v473_v0 }
 0x1bb   :  { %v424_v6 = vadd.f32 %v416_v46, %v358_v51  ;;  %v425_v1 = vadd.f32 %v417_v42, %v359_v20  ;;  %v489_v25 = vadd.f32 %v481_v28, %v422_v48  ;;  %v607_v31 = vpop.permute.xlu2 %606 }
 0x1c1   :  { %v479_v30 = vpop.permute.xlu0 %478  ;;  %v475_v61 = vpop.permute.xlu1 %474 }
 0x1c2   :  { %v484_v15 = vsel %vm480_vm12, %v477_v41, %v479_v30  ;;  %v482_v3 = vsel %vm480_vm12, %v473_v0, %v475_v61  ;;  %v483_v53 = vsel %vm480_vm12, %v475_v61, %v477_v41 }
 0x1c3   :  { %v492_v17 = vadd.f32 %v484_v15, %v425_v1  ;;  %v490_v13 = vadd.f32 %v482_v3, %v423_v24  ;;  %v491_v18 = vadd.f32 %v483_v53, %v424_v6  ;;  %v611_v6 = vpop.permute.xlu2 %610 }
 0x1c9   :  { %v538_v35 = vpop.permute.xlu0 %537  ;;  %v540_v52 = vpop.permute.xlu1 %539 }
 0x1ca   :  { %v548_v23 = vsel %vm547_vm13, %v538_v35, %v540_v52  ;;  %v549_v51 = vsel %vm547_vm13, %v540_v52, %v542_v27 }
 0x1cb   :  { %v556_v20 = vadd.f32 %v548_v23, %v489_v25  ;;  %v557_v48 = vadd.f32 %v549_v51, %v490_v13 }
 0x1d1   :  { %v544_v46 = vpop.permute.xlu0 %543  ;;  %v546_v42 = vpop.permute.xlu1 %545 }
 0x1d2   :  { %v550_v0 = vsel %vm547_vm13, %v542_v27, %v544_v46  ;;  %v551_v41 = vsel %vm547_vm13, %v544_v46, %v546_v42 }
 0x1d3   :  { %v558_v28 = vadd.f32 %v550_v0, %v491_v18  ;;  %v559_v24 = vadd.f32 %v551_v41, %v492_v17  ;;  %v676_v17 = vpop.permute.xlu2 %675 }
 0x1d9   :  { %v613_v1 = vpop.permute.xlu0 %612  ;;  %v605_v30 = vpop.permute.xlu1 %604 }
 0x1da   :  { %v618_v61 = vsel %vm614_vm14, %v611_v6, %v613_v1  ;;  %v615_v15 = vsel %vm614_vm14, %v605_v30, %v607_v31 }
 0x1db   :  { %v626_v3 = vadd.f32 %v618_v61, %v559_v24  ;;  %v623_v25 = vadd.f32 %v615_v15, %v556_v20 }
 0x1e1   :  { %v672_v53 = vpop.permute.xlu0 %671  ;;  %v609_v13 = vpop.permute.xlu1 %608 }
 0x1e2   :  { %v616_v35 = vsel %vm614_vm14, %v607_v31, %v609_v13  ;;  %v617_v27 = vsel %vm614_vm14, %v609_v13, %v611_v6 }
 0x1e3   :  { %v624_v52 = vadd.f32 %v616_v35, %v557_v48  ;;  %v625_v23 = vadd.f32 %v617_v27, %v558_v28  ;;  %v1388_v35 = vmov 19  }
 0x1e4   :  { %1329 = vset.pattern.permute.xlu2 %v1388_v35 }
 0x1e9   :  { %v678_v18 = vpop.permute.xlu0 %677  ;;  %v674_v51 = vpop.permute.xlu1 %673 }
 0x1ea   :  { %v684_v46 = vsel %vm681_vm15, %v676_v17, %v678_v18  ;;  %v682_v42 = vsel %vm681_vm15, %v672_v53, %v674_v51  ;;  %v683_v0 = vsel %vm681_vm15, %v674_v51, %v676_v17 }
 0x1eb   :  { %v692_v41 = vadd.f32 %v684_v46, %v625_v23  ;;  %v690_v20 = vadd.f32 %v682_v42, %v623_v25  ;;  %v691_v24 = vadd.f32 %v683_v0, %v624_v52  ;;  %v717_v23 = vpop.permute.xlu2 %716 }
 0x1ed   :  { %v700_v1 = vmul.f32 %v1908_v59, %v692_v41  ;;  %v698_v31 = vmul.f32 %v1908_v59, %v690_v20  ;;  %v699_v48 = vmul.f32 %v1908_v59, %v691_v24 }
 0x1f1   :  { %v704_v28 = vpop.permute.xlu0 %703  ;;  %v680_v6 = vpop.permute.xlu1 %679 }
 0x1f2   :  { %v2002_v30 = vadd.f32 %v704_v28, %v698_v31  ;;  %v2004_v61 = vadd.f32 %v704_v28, %v699_v48  ;;  %v2006_v15 = vadd.f32 %v704_v28, %v700_v1  ;;  %v685_v53 = vsel %vm681_vm15, %v678_v18, %v680_v6 }
 0x1f3   :  { %v693_v13 = vadd.f32 %v685_v53, %v626_v3  ;;  %v721_v51 = vpop.permute.xlu2 %720  ;;  %v2045_v53 = vld [vmem:[%s2307_s2] sm:$0xff] }
 0x1f4   :  { %v2030_v31 = vsel %vm128_vm1, %v721_v51, 0.0 }
 0x1f5   :  { %v701_v25 = vmul.f32 %v1908_v59, %v693_v13  ;;  %v1389_v13 = vmov 20  }
 0x1f7   :  { %v2010_v27 = vadd.f32 %v704_v28, %v701_v25 }
 0x1f9   :  { %v715_v52 = vpop.permute.xlu1 %714 }
 0x1fa   :  { %v2013_v46 = vsel %vm128_vm1, %v715_v52, %v717_v23  ;;  %v2016_v42 = vsel %vm128_vm1, 0.0, %v715_v52  ;;  %v2048_v35 = vpop.permute.xlu0 %737 }
 0x1fb   :  { %v749_v3 = vmul.f32 %v2013_v46, %v1686_v10  ;;  %v748_v18 = vmul.f32 %v2016_v42, %v1556_v36  ;;  %v752_v10 = vmul.f32 %v2030_v31, %v1572_v4  ;;  %v2328_v36 = vld [vmem:[#allocation3_spill] sm:$0xff] }
 0x201   :  { %v719_v17 = vpop.permute.xlu1 %718 }
 0x202   :  { %v2019_v0 = vsel %vm128_vm1, %v719_v17, %v721_v51  ;;  %v789_v51 = vmul.f32 %v2016_v42, %v1586_v16 }
 0x203   :  { %v751_v59 = vmul.f32 %v2019_v0, %v1722_v19  ;;  %v2034_v19 = vsel %vm128_vm1, %v717_v23, %v719_v17  ;;  %v2329_v23 = vld [vmem:[#allocation4_spill] sm:$0xff] }
 0x204   :  { %v750_v48 = vmul.f32 %v2034_v19, %v2328_v36  ;;  %v791_v52 = vmul.f32 %v2034_v19, %v1745_v2  ;;  %v790_v17 = vmul.f32 %v2013_v46, %v2329_v23  ;;  %v2331_v2 = vperm.slane %v1445_v8, 0 }
 0x205   :  { %v793_v8 = vmul.f32 %v2030_v31, %v1601_v21  ;;  %v792_v23 = vmul.f32 %v2019_v0, %v1761_v26  ;;  %v1390_v21 = vmov 21   ;;  %v831_v26 = vmul.f32 %v2013_v46, %v1767_v9 }
 0x206   :  { %v833_v9 = vmul.f32 %v2019_v0, %v1789_v55 }
 0x209   :  { %v755_v41 = vpop.permute.xlu1 %754 }
 0x20a   :  { %v760_v20 = vmul.f32 %v755_v41, %v751_v59  ;;  %v758_v24 = vmul.f32 %v755_v41, %v749_v3  ;;  %v757_v1 = vmul.f32 %v755_v41, %v748_v18  ;;  %v761_v28 = vmul.f32 %v755_v41, %v752_v10 }
 0x20b   :  { %v759_v6 = vmul.f32 %v755_v41, %v750_v48  ;;  %v2332_v10 = vperm.slane %v1440_v7, 0 }
 0x20c   :  { %773 = vrot.lane.b32.xlu0 %v760_v20, %s1377_s1  ;;  %769 = vrot.lane.b32.xlu1 %v758_v24, %s1377_s1  ;;  %v2330_v20 = vperm.slane %v1459_v14, 0 }
 0x20d   :  { %767 = vrot.lane.b32.xlu2 %v757_v1, %s1377_s1  ;;  %v732_v1 = vmul.f32 %v2016_v42, %v2331_v2  ;;  %v733_v16 = vmul.f32 %v2013_v46, %v2332_v10  ;;  %v834_v10 = vmul.f32 %v2030_v31, %v1591_v50 }
 0x20e   :  { %v734_v24 = vmul.f32 %v2034_v19, %v2330_v20 }
 0x20f   :  { %v741_v14 = vmul.f32 %v2048_v35, %v733_v16 }
 0x210   :  { %v742_v36 = vmul.f32 %v2048_v35, %v734_v24 }
 0x214   :  { %775 = vrot.lane.b32.xlu1 %v761_v28, %s1377_s1  ;;  %v740_v28 = vmul.f32 %v2048_v35, %v732_v1 }
 0x215   :  { %771 = vrot.lane.b32.xlu2 %v759_v6, %s1377_s1 }
 0x21d   :  { %795 = vperm.xlu2 %1329, %v2045_v53  }
 0x225   :  { %1330 = vset.pattern.permute.xlu2 %v1389_v13 }
 0x267   :  { %v768_v25 = vpop.permute.xlu2 %767 }
 0x26f   :  { %v772_v4 = vpop.permute.xlu2 %771 }
 0x277   :  { %v796_v59 = vpop.permute.xlu2 %795 }
 0x278   :  { %v800_v3 = vmul.f32 %v796_v59, %v791_v52  ;;  %v799_v18 = vmul.f32 %v796_v59, %v790_v17  ;;  %v798_v41 = vmul.f32 %v796_v59, %v789_v51 }
 0x27a   :  { %812 = vrot.lane.b32.xlu2 %v800_v3, %s1378_s18  ;;  %810 = vrot.lane.b32.xlu1 %v799_v18, %s1378_s18  ;;  %v802_v18 = vmul.f32 %v796_v59, %v793_v8 }
 0x27b   :  { %808 = vrot.lane.b32.xlu0 %v798_v41, %s1378_s18  ;;  %v801_v41 = vmul.f32 %v796_v59, %v792_v23 }
 0x27e   :  { %v2069_v48 = vpop.permute.xlu0 %773  ;;  %v770_v6 = vpop.permute.xlu1 %769 }
 0x27f   :  { %v779_v13 = vsel %vm213_vm8, %v772_v4, %v2069_v48  ;;  %v777_v7 = vsel %vm213_vm8, %v768_v25, %v770_v6  ;;  %v778_v52 = vsel %vm213_vm8, %v770_v6, %v772_v4  ;;  %v832_v25 = vmul.f32 %v2034_v19, %v1615_v45 }
 0x280   :  { %v787_v17 = vadd.f32 %v779_v13, %v742_v36  ;;  %v785_v51 = vadd.f32 %v777_v7, %v740_v28  ;;  %v786_v3 = vadd.f32 %v778_v52, %v741_v14  ;;  %v830_v4 = vmul.f32 %v2016_v42, %v1578_v49 }
 0x281   :  { %v1391_v52 = vmov 22  }
 0x282   :  { %836 = vperm.xlu2 %1330, %v2045_v53   ;;  %816 = vrot.lane.b32.xlu1 %v802_v18, %s1378_s18  ;;  %v873_v18 = vmul.f32 %v2034_v19, %v1627_v32 }
 0x283   :  { %814 = vrot.lane.b32.xlu0 %v801_v41, %s1378_s18  ;;  %v872_v41 = vmul.f32 %v2013_v46, %v1783_v22  ;;  %v874_v22 = vmul.f32 %v2019_v0, %v1817_v5 }
 0x286   :  { %v2095_v45 = vpop.permute.xlu1 %775 }
 0x28a   :  { %1331 = vset.pattern.permute.xlu2 %v1390_v21 }
 0x2d4   :  { %v813_v20 = vpop.permute.xlu2 %812 }
 0x2dc   :  { %v837_v24 = vpop.permute.xlu2 %836 }
 0x2dd   :  { %v841_v59 = vmul.f32 %v837_v24, %v832_v25  ;;  %v840_v2 = vmul.f32 %v837_v24, %v831_v26  ;;  %v839_v1 = vmul.f32 %v837_v24, %v830_v4  ;;  %v843_v16 = vmul.f32 %v837_v24, %v834_v10 }
 0x2de   :  { %v842_v49 = vmul.f32 %v837_v24, %v833_v9 }
 0x2df   :  { %853 = vrot.lane.b32.xlu2 %v841_v59, %s1379_s19  ;;  %851 = vrot.lane.b32.xlu1 %v840_v2, %s1379_s19 }
 0x2e0   :  { %849 = vrot.lane.b32.xlu0 %v839_v1, %s1379_s19 }
 0x2e7   :  { %877 = vperm.xlu2 %1331, %v2045_v53   ;;  %857 = vrot.lane.b32.xlu1 %v843_v16, %s1379_s19  ;;  %v1392_v16 = vmov 23  }
 0x2e8   :  { %855 = vrot.lane.b32.xlu0 %v842_v49, %s1379_s19 }
 0x2ec   :  { %v811_v36 = vpop.permute.xlu1 %810 }
 0x2ed   :  { %v819_v28 = vsel %vm280_vm9, %v811_v36, %v813_v20  ;;  %v809_v14 = vpop.permute.xlu0 %808 }
 0x2ee   :  { %v827_v6 = vadd.f32 %v819_v28, %v786_v3  ;;  %v818_v50 = vsel %vm280_vm9, %v809_v14, %v811_v36  ;;  %v871_v3 = vmul.f32 %v2016_v42, %v1620_v29  ;;  %v914_v36 = vmul.f32 %v2034_v19, %v1640_v39 }
 0x2ef   :  { %v826_v8 = vadd.f32 %v818_v50, %v785_v51  ;;  %1332 = vset.pattern.permute.xlu2 %v1391_v52  ;;  %v913_v28 = vmul.f32 %v2013_v46, %v1823_v54  ;;  %v912_v14 = vmul.f32 %v2016_v42, %v1629_v33  ;;  %v915_v54 = vmul.f32 %v2019_v0, %v1840_v37 }
 0x2f0   :  { %v735_v33 = vmul.f32 %v2019_v0, %v142_v60  ;;  %v780_v37 = vsel %vm213_vm8, %v2069_v48, %v2095_v45 }
 0x2f4   :  { %v817_v32 = vpop.permute.xlu1 %816 }
 0x2f5   :  { %v2104_v13 = vpop.permute.xlu0 %814 }
 0x2f6   :  { %v820_v55 = vsel %vm280_vm9, %v813_v20, %v2104_v13 }
 0x2f7   :  { %v828_v7 = vadd.f32 %v820_v55, %v787_v17  ;;  %v875_v17 = vmul.f32 %v2030_v31, %v1631_v34 }
 0x339   :  { %v854_v23 = vpop.permute.xlu2 %853 }
 0x341   :  { %v878_v21 = vpop.permute.xlu2 %877 }
 0x342   :  { %v882_v51 = vmul.f32 %v878_v21, %v873_v18  ;;  %v881_v25 = vmul.f32 %v878_v21, %v872_v41  ;;  %v880_v26 = vmul.f32 %v878_v21, %v871_v3  ;;  %v884_v20 = vmul.f32 %v878_v21, %v875_v17 }
 0x343   :  { %v883_v4 = vmul.f32 %v878_v21, %v874_v22 }
 0x344   :  { %894 = vrot.lane.b32.xlu2 %v882_v51, %s1380_s20  ;;  %892 = vrot.lane.b32.xlu1 %v881_v25, %s1380_s20  ;;  %v743_v51 = vmul.f32 %v2048_v35, %v735_v33  ;;  %v1394_v35 = vmov 25  }
 0x345   :  { %890 = vrot.lane.b32.xlu0 %v880_v26, %s1380_s20  ;;  %v821_v26 = vsel %vm280_vm9, %v2104_v13, %v817_v32  ;;  %1335 = vset.pattern.permute.xlu1 %v1394_v35  ;;  %v955_v13 = vmul.f32 %v2034_v19, %v1655_v56  ;;  %v954_v32 = vmul.f32 %v2013_v46, %v1856_v38 }
 0x346   :  { %v788_v12 = vadd.f32 %v780_v37, %v743_v51  ;;  %v956_v56 = vmul.f32 %v2019_v0, %v1873_v44  ;;  %v1397_v51 = vmov 28  }
 0x348   :  { %v829_v17 = vadd.f32 %v821_v26, %v788_v12 }
 0x34c   :  { %918 = vperm.xlu2 %1332, %v2045_v53   ;;  %898 = vrot.lane.b32.xlu1 %v884_v20, %s1380_s20 }
 0x34d   :  { %896 = vrot.lane.b32.xlu0 %v883_v4, %s1380_s20 }
 0x351   :  { %v852_v29 = vpop.permute.xlu1 %851 }
 0x352   :  { %v860_v24 = vsel %vm347_vm10, %v852_v29, %v854_v23  ;;  %v850_v59 = vpop.permute.xlu0 %849 }
 0x353   :  { %v868_v2 = vadd.f32 %v860_v24, %v827_v6  ;;  %v859_v1 = vsel %vm347_vm10, %v850_v59, %v852_v29  ;;  %v1393_v59 = vmov 24  }
 0x354   :  { %v867_v34 = vadd.f32 %v859_v1, %v826_v8  ;;  %1333 = vset.pattern.permute.xlu2 %v1392_v16  ;;  %v953_v1 = vmul.f32 %v2016_v42, %v1646_v43  ;;  %v957_v16 = vmul.f32 %v2030_v31, %v1658_v57 }
 0x359   :  { %v858_v39 = vpop.permute.xlu1 %857 }
 0x35a   :  { %v856_v10 = vpop.permute.xlu0 %855 }
 0x35b   :  { %v861_v9 = vsel %vm347_vm10, %v854_v23, %v856_v10  ;;  %v862_v60 = vsel %vm347_vm10, %v856_v10, %v858_v39  ;;  %v997_v39 = vmul.f32 %v2019_v0, %v1895_v58  ;;  %v2333_v58 = vld [vmem:[#allocation2_spill] sm:$0xff] }
 0x35c   :  { %v869_v5 = vadd.f32 %v861_v9, %v828_v7  ;;  %v916_v7 = vmul.f32 %v2030_v31, %v1642_v40  ;;  %v870_v20 = vadd.f32 %v862_v60, %v829_v17  ;;  %v996_v37 = vmul.f32 %v2034_v19, %v2333_v58 }
 0x39e   :  { %v895_v49 = vpop.permute.xlu2 %894 }
 0x3a6   :  { %v919_v6 = vpop.permute.xlu2 %918 }
 0x3a7   :  { %v923_v50 = vmul.f32 %v919_v6, %v914_v36  ;;  %v922_v55 = vmul.f32 %v919_v6, %v913_v28  ;;  %v921_v8 = vmul.f32 %v919_v6, %v912_v14  ;;  %v925_v52 = vmul.f32 %v919_v6, %v916_v7 }
 0x3a8   :  { %v924_v23 = vmul.f32 %v919_v6, %v915_v54  ;;  %v995_v7 = vmul.f32 %v2013_v46, %v1883_v47  ;;  %v994_v54 = vmul.f32 %v2016_v42, %v1671_v62  ;;  %v998_v47 = vmul.f32 %v2030_v31, %v1673_v63 }
 0x3a9   :  { %935 = vrot.lane.b32.xlu2 %v923_v50, %s1381_s21  ;;  %933 = vrot.lane.b32.xlu1 %v922_v55, %s1381_s21 }
 0x3aa   :  { %931 = vrot.lane.b32.xlu0 %v921_v8, %s1381_s21 }
 0x3b1   :  { %959 = vperm.xlu2 %1333, %v2045_v53   ;;  %939 = vrot.lane.b32.xlu1 %v925_v52, %s1381_s21 }
 0x3b2   :  { %937 = vrot.lane.b32.xlu0 %v924_v23, %s1381_s21 }
 0x3b6   :  { %v893_v18 = vpop.permute.xlu1 %892 }
 0x3b7   :  { %v901_v41 = vsel %vm413_vm11, %v893_v18, %v895_v49  ;;  %v891_v40 = vpop.permute.xlu0 %890 }
 0x3b8   :  { %v909_v3 = vadd.f32 %v901_v41, %v868_v2  ;;  %v900_v21 = vsel %vm413_vm11, %v891_v40, %v893_v18  ;;  %v1395_v41 = vmov 26  }
 0x3b9   :  { %v908_v25 = vadd.f32 %v900_v21, %v867_v34  ;;  %1334 = vset.pattern.permute.xlu2 %v1393_v59  ;;  %v1396_v21 = vmov 27  }
 0x3ba   :  { %1337 = vset.pattern.permute.xlu0 %v1396_v21 }
 0x3be   :  { %v899_v22 = vpop.permute.xlu1 %898 }
 0x3bf   :  { %v897_v4 = vpop.permute.xlu0 %896 }
 0x3c0   :  { %v902_v29 = vsel %vm413_vm11, %v895_v49, %v897_v4  ;;  %v903_v48 = vsel %vm413_vm11, %v897_v4, %v899_v22 }
 0x3c1   :  { %v910_v45 = vadd.f32 %v902_v29, %v869_v5  ;;  %v2157_v24 = vadd.f32 %v903_v48, %v870_v20 }
 0x403   :  { %v936_v2 = vpop.permute.xlu2 %935 }
 0x40b   :  { %v960_v34 = vpop.permute.xlu2 %959 }
 0x40c   :  { %v964_v10 = vmul.f32 %v960_v34, %v955_v13  ;;  %v963_v9 = vmul.f32 %v960_v34, %v954_v32  ;;  %v962_v5 = vmul.f32 %v960_v34, %v953_v1  ;;  %v966_v38 = vmul.f32 %v960_v34, %v957_v16  ;;  %v2335_v32 = vld [vmem:[#allocation7_spill] sm:$0xff] }
 0x40d   :  { %v965_v49 = vmul.f32 %v960_v34, %v956_v56  ;;  %v1036_v1 = vmul.f32 %v2013_v46, %v2335_v32  ;;  %v2336_v34 = vld [vmem:[#allocation5_spill] sm:$0xff]  ;;  %v1039_v56 = vmul.f32 %v2030_v31, %v1717_v11  ;;  %v1399_v11 = vmov 32  }
 0x40e   :  { %976 = vrot.lane.b32.xlu2 %v964_v10, %s1382_s22  ;;  %974 = vrot.lane.b32.xlu1 %v963_v9, %s1382_s22  ;;  %v1035_v10 = vmul.f32 %v2016_v42, %v2336_v34  ;;  %v1398_v42 = vmov 29   ;;  %v1400_v31 = vmov 30   ;;  %v1172_v32 = vperm.slane %v2002_v30, 1 }
 0x40f   :  { %972 = vrot.lane.b32.xlu0 %v962_v5, %s1382_s22 }
 0x416   :  { %1000 = vperm.xlu2 %1334, %v2045_v53   ;;  %980 = vrot.lane.b32.xlu1 %v966_v38, %s1382_s22 }
 0x417   :  { %978 = vrot.lane.b32.xlu0 %v965_v49, %s1382_s22 }
 0x41b   :  { %v934_v43 = vpop.permute.xlu1 %933 }
 0x41c   :  { %v942_v36 = vsel %vm480_vm12, %v934_v43, %v936_v2  ;;  %v932_v28 = vpop.permute.xlu0 %931 }
 0x41d   :  { %v950_v14 = vadd.f32 %v942_v36, %v909_v3  ;;  %v941_v6 = vsel %vm480_vm12, %v932_v28, %v934_v43  ;;  %v1402_v43 = vmov 34   ;;  %v1403_v36 = vmov 37  }
 0x41e   :  { %v949_v50 = vadd.f32 %v941_v6, %v908_v25  ;;  %1041 = vperm.xlu1 %1335, %v2045_v53   ;;  %1336 = vset.pattern.permute.xlu2 %v1395_v41  ;;  %v1404_v28 = vmov 31   ;;  %v1406_v6 = vmov 36  }
 0x423   :  { %v940_v40 = vpop.permute.xlu1 %939 }
 0x424   :  { %v938_v57 = vpop.permute.xlu0 %937 }
 0x425   :  { %v943_v44 = vsel %vm480_vm12, %v936_v2, %v938_v57  ;;  %v944_v22 = vsel %vm480_vm12, %v938_v57, %v940_v40  ;;  %v2334_v2 = vld [vmem:[#allocation6_spill] sm:$0xff] }
 0x426   :  { %v951_v55 = vadd.f32 %v943_v44, %v910_v45  ;;  %1338 = vset.pattern.permute.xlu1 %v1397_v51  ;;  %v952_v4 = vadd.f32 %v944_v22, %v2157_v24  ;;  %v1037_v13 = vmul.f32 %v2034_v19, %v2334_v2  ;;  %v2337_v19 = vld [vmem:[#allocation8_spill] sm:$0xff] }
 0x427   :  { %v1038_v38 = vmul.f32 %v2019_v0, %v2337_v19  ;;  %v1401_v0 = vmov 33   ;;  %v1190_v19 = vperm.slane %v2006_v15, 2 }
 0x468   :  { %v977_v8 = vpop.permute.xlu2 %976 }
 0x470   :  { %v1001_v52 = vpop.permute.xlu2 %1000 }
 0x471   :  { %v1004_v23 = vmul.f32 %v1001_v52, %v995_v7  ;;  %v1006_v33 = vmul.f32 %v1001_v52, %v997_v39  ;;  %v1003_v18 = vmul.f32 %v1001_v52, %v994_v54  ;;  %v1007_v62 = vmul.f32 %v1001_v52, %v998_v47 }
 0x472   :  { %v1005_v3 = vmul.f32 %v1001_v52, %v996_v37 }
 0x473   :  { %1015 = vrot.lane.b32.xlu2 %v1004_v23, %s1384_s23  ;;  %1019 = vrot.lane.b32.xlu1 %v1006_v33, %s1384_s23 }
 0x474   :  { %1013 = vrot.lane.b32.xlu0 %v1003_v18, %s1384_s23 }
 0x47b   :  { %1021 = vrot.lane.b32.xlu2 %v1007_v62, %s1384_s23 }
 0x47c   :  { %1017 = vrot.lane.b32.xlu0 %v1005_v3, %s1384_s23 }
 0x480   :  { %v975_v25 = vpop.permute.xlu1 %974 }
 0x481   :  { %v983_v26 = vsel %vm547_vm13, %v975_v25, %v977_v8  ;;  %v973_v12 = vpop.permute.xlu0 %972 }
 0x482   :  { %v2195_v60 = vadd.f32 %v983_v26, %v950_v14  ;;  %v982_v63 = vsel %vm547_vm13, %v973_v12, %v975_v25  ;;  %v1405_v14 = vmov 35  }
 0x483   :  { %v2198_v17 = vadd.f32 %v982_v63, %v949_v50 }
 0x488   :  { %v981_v20 = vpop.permute.xlu1 %980 }
 0x489   :  { %v979_v29 = vpop.permute.xlu0 %978 }
 0x48a   :  { %v984_v48 = vsel %vm547_vm13, %v977_v8, %v979_v29  ;;  %v985_v45 = vsel %vm547_vm13, %v979_v29, %v981_v20 }
 0x48b   :  { %v2204_v59 = vadd.f32 %v984_v48, %v951_v55  ;;  %v2206_v35 = vadd.f32 %v985_v45, %v952_v4 }
 0x490   :  { %v1042_v9 = vpop.permute.xlu1 %1041 }
 0x491   :  { %v1046_v24 = vmul.f32 %v1042_v9, %v1037_v13  ;;  %v1045_v5 = vmul.f32 %v1042_v9, %v1036_v1  ;;  %v1044_v16 = vmul.f32 %v1042_v9, %v1035_v10  ;;  %v1048_v46 = vmul.f32 %v1042_v9, %v1039_v56 }
 0x492   :  { %v1047_v49 = vmul.f32 %v1042_v9, %v1038_v38  ;;  %v1189_v56 = vperm.slane %v2004_v61, 2  ;;  %v1204_v38 = vperm.slane %v2002_v30, 3 }
 0x493   :  { %1058 = vrot.lane.b32.xlu2 %v1046_v24, %s1385_s24  ;;  %1056 = vrot.lane.b32.xlu1 %v1045_v5, %s1385_s24  ;;  %v1157_v24 = vperm.slane %v2004_v61, 0  ;;  %v1158_v5 = vperm.slane %v2006_v15, 0 }
 0x494   :  { %1054 = vrot.lane.b32.xlu0 %v1044_v16, %s1385_s24  ;;  %v1188_v16 = vperm.slane %v2002_v30, 2 }
 0x49b   :  { %1077 = vperm.xlu2 %1336, %v2045_v53   ;;  %1062 = vrot.lane.b32.xlu1 %v1048_v46, %s1385_s24  ;;  %v1205_v46 = vperm.slane %v2004_v61, 3 }
 0x49c   :  { %1060 = vrot.lane.b32.xlu0 %v1047_v49, %s1385_s24  ;;  %v1206_v49 = vperm.slane %v2006_v15, 3 }
 0x4a3   :  { %1339 = vset.pattern.permute.xlu2 %v1398_v42  ;;  %1097 = vperm.xlu1 %1338, %v2045_v53   ;;  %v1175_v42 = vperm.slane %v2010_v27, 1 }
 0x4a4   :  { %1085 = vperm.xlu0 %1337, %v2045_v53   ;;  %1113 = vperm.xlu2 %1339, %v2045_v53  }
 0x4ab   :  { %1340 = vset.pattern.permute.xlu1 %v1399_v11 }
 0x4ac   :  { %1342 = vset.pattern.permute.xlu0 %v1400_v31  ;;  %1341 = vset.pattern.permute.xlu2 %v1401_v0  ;;  %v1159_v31 = vperm.slane %v2010_v27, 0  ;;  %v1191_v0 = vperm.slane %v2010_v27, 2 }
 0x4ad   :  { %1161 = vperm.xlu1 %1340, %v2045_v53   ;;  %1129 = vperm.xlu0 %1342, %v2045_v53  }
 0x4ae   :  { %1177 = vperm.xlu2 %1341, %v2045_v53  }
 0x4b5   :  { %1343 = vset.pattern.permute.xlu1 %v1402_v43  ;;  %1347 = vset.pattern.permute.xlu0 %v1403_v36  ;;  %v1207_v43 = vperm.slane %v2010_v27, 3 }
 0x4b6   :  { %1193 = vperm.xlu1 %1343, %v2045_v53   ;;  %1344 = vset.pattern.permute.xlu2 %v1404_v28 }
 0x4b7   :  { %1145 = vperm.xlu2 %1344, %v2045_v53   ;;  %1233 = vperm.xlu0 %1347, %v2045_v53  }
 0x4be   :  { %1345 = vset.pattern.permute.xlu1 %v1405_v14 }
 0x4bf   :  { %1209 = vperm.xlu1 %1345, %v2045_v53   ;;  %1346 = vset.pattern.permute.xlu2 %v1406_v6 }
 0x4c0   :  { %1225 = vperm.xlu2 %1346, %v2045_v53  }
 0x4cd   :  { %v1016_v50 = vpop.permute.xlu2 %1015 }
 0x4d5   :  { %v1022_v55 = vpop.permute.xlu2 %1021 }
 0x4e5   :  { %v1020_v44 = vpop.permute.xlu1 %1019 }
 0x4e6   :  { %v1014_v57 = vpop.permute.xlu0 %1013  ;;  %v1026_v18 = vsel %vm614_vm14, %v1020_v44, %v1022_v55 }
 0x4e7   :  { %v1023_v41 = vsel %vm614_vm14, %v1014_v57, %v1016_v50  ;;  %v1034_v21 = vadd.f32 %v1026_v18, %v2206_v35  ;;  %v1173_v35 = vperm.slane %v2004_v61, 1 }
 0x4e8   :  { %v1031_v51 = vadd.f32 %v1023_v41, %v2198_v17  ;;  %v1174_v17 = vperm.slane %v2006_v15, 1 }
 0x4ed   :  { %v1059_v39 = vpop.permute.xlu2 %1058 }
 0x4ee   :  { %v1018_v8 = vpop.permute.xlu0 %1017 }
 0x4ef   :  { %v1024_v47 = vsel %vm614_vm14, %v1016_v50, %v1018_v8  ;;  %v1025_v40 = vsel %vm614_vm14, %v1018_v8, %v1020_v44 }
 0x4f0   :  { %v1032_v25 = vadd.f32 %v1024_v47, %v2195_v60  ;;  %v1033_v26 = vadd.f32 %v1025_v40, %v2204_v59  ;;  %v1156_v60 = vperm.slane %v2002_v30, 0 }
 0x4f5   :  { %v1078_v23 = vpop.permute.xlu2 %1077 }
 0x4fe   :  { %v1114_v12 = vpop.permute.xlu2 %1113 }
 0x505   :  { %v1057_v7 = vpop.permute.xlu1 %1056 }
 0x506   :  { %v1055_v54 = vpop.permute.xlu0 %1054  ;;  %v1065_v58 = vsel %vm681_vm15, %v1057_v7, %v1059_v39 }
 0x507   :  { %v1064_v37 = vsel %vm681_vm15, %v1055_v54, %v1057_v7  ;;  %v1073_v63 = vadd.f32 %v1065_v58, %v1032_v25 }
 0x508   :  { %v1072_v22 = vadd.f32 %v1064_v37, %v1031_v51  ;;  %v1178_v11 = vpop.permute.xlu2 %1177 }
 0x509   :  { %v1081_v48 = vmul.f32 %v1078_v23, %v1073_v63  ;;  %v1180_v8 = vmul.f32 %v1178_v11, %v1172_v32  ;;  %v1181_v7 = vmul.f32 %v1178_v11, %v1173_v35  ;;  %v1183_v54 = vmul.f32 %v1178_v11, %v1175_v42 }
 0x50a   :  { %v1080_v45 = vmul.f32 %v1078_v23, %v1072_v22 }
 0x50d   :  { %v1063_v52 = vpop.permute.xlu1 %1062 }
 0x50e   :  { %v1061_v33 = vpop.permute.xlu0 %1060 }
 0x50f   :  { %v1066_v62 = vsel %vm681_vm15, %v1059_v39, %v1061_v33  ;;  %v1067_v3 = vsel %vm681_vm15, %v1061_v33, %v1063_v52  ;;  %v1182_v39 = vmul.f32 %v1178_v11, %v1174_v17 }
 0x510   :  { %v1074_v20 = vadd.f32 %v1066_v62, %v1033_v26  ;;  %v1075_v4 = vadd.f32 %v1067_v3, %v1034_v21 }
 0x511   :  { %v1146_v11 = vpop.permute.xlu2 %1145 }
 0x512   :  { %v1082_v2 = vmul.f32 %v1078_v23, %v1074_v20  ;;  %v1083_v13 = vmul.f32 %v1078_v23, %v1075_v4 }
 0x515   :  { %v1098_v53 = vpop.permute.xlu1 %1097 }
 0x516   :  { %v1086_v29 = vpop.permute.xlu0 %1085 }
 0x517   :  { %v2251_v1 = vadd.f32 %v1086_v29, %v1080_v45  ;;  %v2253_v59 = vadd.f32 %v1086_v29, %v1081_v48  ;;  %v2255_v34 = vadd.f32 %v1086_v29, %v1082_v2  ;;  %v2257_v10 = vadd.f32 %v1086_v29, %v1083_v13 }
 0x519   :  { %v1092_v36 = vperm.slane %v2251_v1, 0  ;;  %v1093_v28 = vperm.slane %v2253_v59, 0  ;;  %v1094_v14 = vperm.slane %v2255_v34, 0  ;;  %v1095_v6 = vperm.slane %v2257_v10, 0 }
 0x51a   :  { %v1108_v50 = vperm.slane %v2251_v1, 1  ;;  %v1109_v57 = vperm.slane %v2253_v59, 1  ;;  %v1110_v44 = vperm.slane %v2255_v34, 1  ;;  %v1111_v55 = vperm.slane %v2257_v10, 1 }
 0x51b   :  { %v1140_v52 = vperm.slane %v2251_v1, 3  ;;  %v1141_v23 = vperm.slane %v2253_v59, 3  ;;  %v1142_v33 = vperm.slane %v2255_v34, 3  ;;  %v1143_v18 = vperm.slane %v2257_v10, 3 }
 0x51c   :  { %v1100_v41 = vmul.f32 %v1098_v53, %v1092_v36  ;;  %v1101_v47 = vmul.f32 %v1098_v53, %v1093_v28  ;;  %v1102_v40 = vmul.f32 %v1098_v53, %v1094_v14  ;;  %v1103_v58 = vmul.f32 %v1098_v53, %v1095_v6 }
 0x51d   :  { %v1116_v37 = vmul.f32 %v1114_v12, %v1108_v50  ;;  %v1117_v62 = vmul.f32 %v1114_v12, %v1109_v57  ;;  %v1118_v3 = vmul.f32 %v1114_v12, %v1110_v44  ;;  %v1119_v21 = vmul.f32 %v1114_v12, %v1111_v55 }
 0x51e   :  { %v1124_v26 = vperm.slane %v2251_v1, 2  ;;  %v1125_v63 = vperm.slane %v2253_v59, 2  ;;  %v1126_v22 = vperm.slane %v2255_v34, 2  ;;  %v1127_v20 = vperm.slane %v2257_v10, 2 }
 0x51f   :  { %v1162_v9 = vpop.permute.xlu1 %1161  ;;  %v1130_v51 = vpop.permute.xlu0 %1129  ;;  %v1120_v35 = vadd.f32 %v1116_v37, %v1100_v41  ;;  %v1121_v12 = vadd.f32 %v1117_v62, %v1101_v47  ;;  %v1122_v17 = vadd.f32 %v1118_v3, %v1102_v40  ;;  %v1123_v42 = vadd.f32 %v1119_v21, %v1103_v58 }
 0x520   :  { %v1164_v4 = vmul.f32 %v1162_v9, %v1156_v60  ;;  %v1165_v29 = vmul.f32 %v1162_v9, %v1157_v24  ;;  %v1166_v48 = vmul.f32 %v1162_v9, %v1158_v5  ;;  %v1167_v45 = vmul.f32 %v1162_v9, %v1159_v31  ;;  %v1226_v37 = vpop.permute.xlu2 %1225 }
 0x521   :  { %v1132_v2 = vmul.f32 %v1130_v51, %v1124_v26  ;;  %v1133_v53 = vmul.f32 %v1130_v51, %v1125_v63  ;;  %v1134_v13 = vmul.f32 %v1130_v51, %v1126_v22  ;;  %v1135_v32 = vmul.f32 %v1130_v51, %v1127_v20 }
 0x522   :  { %v1184_v34 = vadd.f32 %v1180_v8, %v1164_v4  ;;  %v1185_v14 = vadd.f32 %v1181_v7, %v1165_v29  ;;  %v1186_v10 = vadd.f32 %v1182_v39, %v1166_v48  ;;  %v1187_v60 = vadd.f32 %v1183_v54, %v1167_v45 }
 0x523   :  { %v1136_v24 = vadd.f32 %v1132_v2, %v1120_v35  ;;  %v1137_v5 = vadd.f32 %v1133_v53, %v1121_v12  ;;  %v1138_v9 = vadd.f32 %v1134_v13, %v1122_v17  ;;  %v1139_v31 = vadd.f32 %v1135_v32, %v1123_v42 }
 0x524   :  { %v1148_v6 = vmul.f32 %v1146_v11, %v1140_v52  ;;  %v1149_v50 = vmul.f32 %v1146_v11, %v1141_v23  ;;  %v1150_v57 = vmul.f32 %v1146_v11, %v1142_v33  ;;  %v1151_v44 = vmul.f32 %v1146_v11, %v1143_v18 }
 0x526   :  { %v1152_v7 = vadd.f32 %v1148_v6, %v1136_v24  ;;  %v1153_v39 = vadd.f32 %v1149_v50, %v1137_v5  ;;  %v1154_v54 = vadd.f32 %v1150_v57, %v1138_v9  ;;  %v1155_v52 = vadd.f32 %v1151_v44, %v1139_v31 }
 0x528   :  { %v1194_v25 = vpop.permute.xlu1 %1193 }
 0x529   :  { %v1196_v1 = vmul.f32 %v1194_v25, %v1188_v16  ;;  %v1197_v36 = vmul.f32 %v1194_v25, %v1189_v56  ;;  %v1198_v59 = vmul.f32 %v1194_v25, %v1190_v19  ;;  %v1199_v28 = vmul.f32 %v1194_v25, %v1191_v0 }
 0x52b   :  { %v1200_v55 = vadd.f32 %v1196_v1, %v1184_v34  ;;  %v1201_v41 = vadd.f32 %v1197_v36, %v1185_v14  ;;  %v1202_v47 = vadd.f32 %v1198_v59, %v1186_v10  ;;  %v1203_v40 = vadd.f32 %v1199_v28, %v1187_v60 }
 0x531   :  { %v1210_v16 = vpop.permute.xlu1 %1209 }
 0x532   :  { %v1212_v56 = vmul.f32 %v1210_v16, %v1204_v38  ;;  %v1213_v19 = vmul.f32 %v1210_v16, %v1205_v46  ;;  %v1214_v0 = vmul.f32 %v1210_v16, %v1206_v49  ;;  %v1215_v8 = vmul.f32 %v1210_v16, %v1207_v43  ;;  %v1234_v46 = vpop.permute.xlu0 %1233 }
 0x534   :  { %v1216_v23 = vadd.f32 %v1212_v56, %v1200_v55  ;;  %v1217_v33 = vadd.f32 %v1213_v19, %v1201_v41  ;;  %v1218_v18 = vadd.f32 %v1214_v0, %v1202_v47  ;;  %v1219_v58 = vadd.f32 %v1215_v8, %v1203_v40 }
 0x536   :  { %v1220_v30 = vadd.f32 %v1216_v23, %v1152_v7  ;;  %v1221_v38 = vadd.f32 %v1217_v33, %v1153_v39  ;;  %v1222_v62 = vadd.f32 %v1218_v18, %v1154_v54  ;;  %v1223_v61 = vadd.f32 %v1219_v58, %v1155_v52 }
 0x538   :  { %v1228_v3 = vmul.f32 %v1226_v37, %v1220_v30  ;;  %v1229_v15 = vmul.f32 %v1226_v37, %v1221_v38  ;;  %v1230_v49 = vmul.f32 %v1226_v37, %v1222_v62  ;;  %v1231_v21 = vmul.f32 %v1226_v37, %v1223_v61 }
 0x53a   :  { %v1236_v27 = vadd.f32 %v1234_v46, %v1228_v3  ;;  %v1237_v43 = vadd.f32 %v1234_v46, %v1229_v15  ;;  %v1238_v51 = vadd.f32 %v1234_v46, %v1230_v49  ;;  %v1239_v25 = vadd.f32 %v1234_v46, %v1231_v21 }
 0x53c   :  { %v1240_v26 = vmax.f32 %v1236_v27, 0.0  ;;  %v1241_v63 = vmax.f32 %v1237_v43, 0.0  ;;  %v1242_v22 = vmax.f32 %v1238_v51, 0.0  ;;  %v1243_v20 = vmax.f32 %v1239_v25, 0.0 }
 0x53e   :  { %v1244_v4 = vmin.f32 %v1240_v26, 6.0  ;;  %v1245_v29 = vmin.f32 %v1241_v63, 6.0  ;;  %v1246_v48 = vmin.f32 %v1242_v22, 6.0  ;;  %v1247_v45 = vmin.f32 %v1243_v20, 6.0 }
 0x540   :  { %1248 = vst [vmem:[%s2310_s3] sm:$0xff] %v1244_v4 }
 0x541   :  { %1249 = vst [vmem:[%s2310_s3 + $0x8] sm:$0xff] %v1245_v29 }
 0x542   :  { %1250 = vst [vmem:[%s2310_s3 + $0x10] sm:$0xff] %v1246_v48 }
 0x543   :  { %1251 = vst [vmem:[%s2310_s3 + $0x18] sm:$0xff] %v1247_v45 }

</bundles_post_ra>
